<compile_context>
chip_gen: v5e
topology: v5e:2x2
jax: 0.10.0
libtpu: 0.0.40
codegen_flags: <defaults>
</compile_context>

<pallas_src>
import functools

import jax
import jax.numpy as jnp
from jax.experimental import pallas as pl
from jax.experimental.pallas import tpu as pltpu


# ----------------------------------------------------------------------------
# Static helpers (pure Python, evaluated at trace time).
# ----------------------------------------------------------------------------
def _cdiv(a, b):
    return -(-a // b)


def _round_up(a, b):
    return _cdiv(a, b) * b


def _sl(start, size, stride):
    return pl.ds(start, size) if stride == 1 else pl.ds(start, size, stride)


def _vmem_tile_bytes(shape, dtype):
    """Approximate VMEM footprint of a buffer with (8,128)-tiled trailing dims."""
    itemsize = jnp.dtype(dtype).itemsize
    pack = max(1, 4 // itemsize)                      # sub-32-bit packs sublanes
    lead = 1
    for d in shape[:-2]:
        lead *= int(d)
    sub = _round_up(int(shape[-2]), 8 * pack)
    lane = _round_up(int(shape[-1]), 128)
    return lead * sub * lane * itemsize


# ----------------------------------------------------------------------------
# Fused depthwise 3D conv (stride-2 pooling) + LayerNorm kernel.
#   x_ref     : (G*T, H, W, C)      un-padded input, G samples stacked along T
#   w_ref     : (kT, kH, kW, C)     depthwise weights, channels-last
#   gamma/beta: (1, C)              LayerNorm affine params (f32)
#   o_ref     : (G*T2, H2, W2, C)   normalized pooled output
#   xpad_ref  : (G*T, H+2ph, W+2pw, C) VMEM staging scratch (H/W zero-padded)
# ----------------------------------------------------------------------------
def _dwconv3d_ln_kernel(x_ref, w_ref, gamma_ref, beta_ref, o_ref, xpad_ref, *,
                        in_thw, out_thw, ksize, strides, padding,
                        group, hgroup, eps):
    T, H, W = in_thw
    T2, H2, W2 = out_thw
    kt, kh, kw = ksize
    st, sh, sw = strides
    pt, ph, pw = padding
    C = o_ref.shape[-1]
    GT = group * T
    Hp, Wp = H + 2 * ph, W + 2 * pw
    zdt = xpad_ref.dtype

    # ---- Stage the input block into the H/W zero-padded scratch. ------------
    # Only the thin halo border needs zeroing each step (the interior is
    # overwritten below); correct under megacore grid splitting since no state
    # is carried across grid steps.
    if ph > 0:
        zh = jnp.zeros((GT, ph, Wp, C), zdt)
        xpad_ref[:, 0:ph, :, :] = zh
        xpad_ref[:, ph + H:Hp, :, :] = zh
    if pw > 0:
        zw = jnp.zeros((GT, Hp, pw, C), zdt)
        xpad_ref[:, :, 0:pw, :] = zw
        xpad_ref[:, :, pw + W:Wp, :] = zw
    xpad_ref[:, ph:ph + H, pw:pw + W, :] = x_ref[...]

    # ---- Hoisted parameters (loaded/sliced once per grid step). -------------
    w = w_ref[...].astype(jnp.float32)                     # (kt, kh, kw, C)
    wtaps = [[[w[dt, dh, dw, :] for dw in range(kw)]
              for dh in range(kh)] for dt in range(kt)]
    gamma = gamma_ref[...].astype(jnp.float32)              # (1, C)
    beta = beta_ref[...].astype(jnp.float32)                # (1, C)

    # ---- Register-accumulated conv taps + fused LayerNorm epilogue. ---------
    for g in range(group):                                   # static unroll
        for t2 in range(T2):
            # T-halo: taps whose input plane is outside [0, T) contribute zero
            # (implicit zero padding along T), and therefore never read across
            # the sample boundary inside the packed block.
            t_taps = [(dt, st * t2 + dt - pt) for dt in range(kt)]
            t_taps = [(dt, tin) for dt, tin in t_taps if 0 <= tin < T]
            orow = g * T2 + t2
            for h0 in range(0, H2, hgroup):
                rows = min(hgroup, H2 - h0)
                # Register accumulator (zeros-init is a cheap vreg fill; the
                # "center-tap-first" trick is moot here).
                acc = jnp.zeros((1, rows, W2, C), jnp.float32)
                for dt, tin in t_taps:
                    row = g * T + tin
                    for dh in range(kh):
                        hs = sh * h0 + dh
                        for dw in range(kw):
                            slab = xpad_ref[pl.ds(row, 1),
                                            _sl(hs, rows, sh),
                                            _sl(dw, W2, sw), :]
                            acc = acc + slab.astype(jnp.float32) * wtaps[dt][dh][dw]
                # Fused LayerNorm over channels, single store per row group.
                mean = jnp.mean(acc, axis=-1, keepdims=True)
                cen = acc - mean
                var = jnp.mean(cen * cen, axis=-1, keepdims=True)
                out = cen * jax.lax.rsqrt(var + eps) * gamma + beta
                o_ref[pl.ds(orow, 1), pl.ds(h0, rows), :, :] = out.astype(o_ref.dtype)


def depthwise_pool_layernorm(x, conv_w, ln_gamma, ln_beta, *, stride, padding,
                             eps=1e-5):
    """x: (BN, T, H, W, C) channels-last. Returns ((BN, T2, H2, W2, C), (T2, H2, W2))."""
    BN, T, H, W, C = x.shape
    kT, kH, kW, _ = conv_w.shape
    st, sh, sw = stride
    pt, ph, pw = padding
    T2 = (T + 2 * pt - kT) // st + 1
    H2 = (H + 2 * ph - kH) // sh + 1
    W2 = (W + 2 * pw - kW) // sw + 1
    dtype = x.dtype

    # ---- Generation-aware budgets (v5e/v6e: 128 MiB VMEM, 1 TC; v7x: 64, 2 TC).
    try:
        info = pltpu.get_tpu_info()
        vmem_cap = int(getattr(info, "vmem_capacity_bytes", 64 << 20))
    except Exception:
        vmem_cap = 64 << 20
    big_vmem = vmem_cap >= (100 << 20)
    budget = (64 << 20) if big_vmem else (30 << 20)      # per-step working set
    limit_cap = (96 << 20) if big_vmem else (46 << 20)   # vmem_limit_bytes cap
    min_grid = 4 if big_vmem else 8                      # keep both v7x TCs busy

    # H2 row-group size bounded by the vreg budget (acc + one tap slab live).
    per_row_vregs = _cdiv(W2, 8) * _cdiv(C, 128)
    hgroup = max(1, min(H2, 48 // max(1, 2 * per_row_vregs)))

    def step_bytes(g):
        in_blk = _vmem_tile_bytes((g * T, H, W, C), dtype)
        out_blk = _vmem_tile_bytes((g * T2, H2, W2, C), dtype)
        pad_blk = _vmem_tile_bytes((g * T, H + 2 * ph, W + 2 * pw, C), dtype)
        small = 2 * (_vmem_tile_bytes((kT, kH, kW, C), conv_w.dtype)
                     + 2 * _vmem_tile_bytes((1, C), jnp.float32))
        return 2 * in_blk + 2 * out_blk + pad_blk + small

    # ---- Pick G: as many samples per step as fit the budget, but keep the
    # grid long enough for megacore sharding and bound the static unroll.
    taps_per_plane = kT * kH * kW * _cdiv(H2, hgroup)
    g_cap = max(1, BN // min_grid)
    g_cap = min(g_cap, BN, 32, max(1, 4096 // max(1, T2 * taps_per_plane)))
    G = 1
    for g in range(1, g_cap + 1):
        if step_bytes(g) <= budget:
            G = g
    if step_bytes(1) > limit_cap:
        # TODO(synk): T-axis grid split with a 1-plane halo for huge samples.
        raise NotImplementedError("single (b, n) sample exceeds the VMEM budget")

    # Prefer a divisor of BN when it is within 2x of the budget-optimal G
    # (avoids the HBM copy from padding); otherwise pad BN up to a multiple.
    g_div = max(d for d in range(1, G + 1) if BN % d == 0)
    if 2 * g_div >= G:
        G = g_div
    BNp = _cdiv(BN, G) * G
    if BNp != BN:
        x = jnp.concatenate(
            [x, jnp.zeros((BNp - BN, T, H, W, C), dtype)], axis=0)

    vmem_limit = int(min(limit_cap, max(32 << 20, int(1.25 * step_bytes(G)))))

    x_flat = x.reshape(BNp * T, H, W, C)                   # free contiguous reshape
    gamma2 = ln_gamma.reshape(1, C).astype(jnp.float32)
    beta2 = ln_beta.reshape(1, C).astype(jnp.float32)

    kern = functools.partial(
        _dwconv3d_ln_kernel,
        in_thw=(T, H, W), out_thw=(T2, H2, W2),
        ksize=(kT, kH, kW), strides=(st, sh, sw), padding=(pt, ph, pw),
        group=G, hgroup=hgroup, eps=eps)

    out = pl.pallas_call(
        kern,
        out_shape=jax.ShapeDtypeStruct((BNp * T2, H2, W2, C), dtype),
        grid=(BNp // G,),
        in_specs=[
            pl.BlockSpec((G * T, H, W, C), lambda i: (i, 0, 0, 0)),
            pl.BlockSpec((kT, kH, kW, C), lambda i: (0, 0, 0, 0)),
            pl.BlockSpec((1, C), lambda i: (0, 0)),
            pl.BlockSpec((1, C), lambda i: (0, 0)),
        ],
        out_specs=pl.BlockSpec((G * T2, H2, W2, C), lambda i: (i, 0, 0, 0)),
        scratch_shapes=[pltpu.VMEM((G * T, H + 2 * ph, W + 2 * pw, C), dtype)],
        compiler_params=pltpu.CompilerParams(
            dimension_semantics=("parallel",),
            vmem_limit_bytes=vmem_limit),
    )(x_flat, conv_w, gamma2, beta2)

    out = out.reshape(BNp, T2, H2, W2, C)[:BN]
    return out, (T2, H2, W2)


# ----------------------------------------------------------------------------
# Full _AttentionPool.forward equivalent (conv pooling path, has_cls_embed=True).
# ----------------------------------------------------------------------------
def attention_pool_forward(tensor, thw_shape, conv_w, ln_gamma, ln_beta,
                           stride=(2, 2, 2), padding=(1, 1, 1), eps=1e-5):
    """tensor: (B, N, L, C) with L = 1 + T*H*W. Returns (out, thw_out)."""
    B, N, L, C = tensor.shape
    T, H, W = thw_shape
    assert L == 1 + T * H * W

    cls_tok = tensor[:, :, :1, :]                          # (B, N, 1, C)
    x = tensor[:, :, 1:, :].reshape(B * N, T, H, W, C)     # channels-last view

    pooled, (T2, H2, W2) = depthwise_pool_layernorm(
        x, conv_w, ln_gamma, ln_beta, stride=stride, padding=padding, eps=eps)
    L2 = T2 * H2 * W2
    pooled = pooled.reshape(B, N, L2, C)                   # LayerNorm fused in

    # LayerNorm of the (tiny) cls-token rows: plain-JAX glue, only B*N rows.
    mu = jnp.mean(cls_tok, axis=-1, keepdims=True)
    var = jnp.mean((cls_tok - mu) ** 2, axis=-1, keepdims=True)
    cls_ln = (cls_tok - mu) * jax.lax.rsqrt(var + eps) * ln_gamma + ln_beta

    out = jnp.concatenate([cls_ln.astype(tensor.dtype), pooled], axis=2)
    return out, [T2, H2, W2]


# ----------------------------------------------------------------------------
# Pure-JAX reference (mirrors the PyTorch NCDHW code path) for validation.
# ----------------------------------------------------------------------------
def _reference(tensor, thw_shape, conv_w_torch, ln_gamma, ln_beta,
               stride=(2, 2, 2), padding=(1, 1, 1), eps=1e-5):
    B, N, L, C = tensor.shape
    T, H, W = thw_shape
    cls_tok = tensor[:, :, :1, :]
    x = tensor[:, :, 1:, :].reshape(B * N, T, H, W, C)
    x_ncdhw = jnp.transpose(x, (0, 4, 1, 2, 3))            # (BN, C, T, H, W)
    y = jax.lax.conv_general_dilated(
        x_ncdhw, conv_w_torch, window_strides=stride,
        padding=[(p, p) for p in padding],
        dimension_numbers=("NCDHW", "OIDHW", "NCDHW"),
        feature_group_count=C)
    T2, H2, W2 = y.shape[2], y.shape[3], y.shape[4]
    L2 = T2 * H2 * W2
    y = y.reshape(B, N, C, L2).transpose(0, 1, 3, 2)        # (B, N, L2, C)
    out = jnp.concatenate([cls_tok, y], axis=2)
    mean = jnp.mean(out, axis=-1, keepdims=True)
    var = jnp.mean((out - mean) ** 2, axis=-1, keepdims=True)
    out = (out - mean) * jax.lax.rsqrt(var + eps) * ln_gamma + ln_beta
    return out, [T2, H2, W2]


if __name__ == "__main__":
    def run_case(key, B, N, C, T, H, W):
        k1, k2, k3, k4 = jax.random.split(key, 4)
        kernel, stride, padding = (3, 3, 3), (2, 2, 2), (1, 1, 1)
        L = 1 + T * H * W
        tensor = jax.random.normal(k1, (B, N, L, C), dtype=jnp.float32)
        # Depthwise Conv3d weight, PyTorch layout (C_out, C_in/groups=1, kT, kH, kW)
        conv_w_torch = jax.random.normal(k2, (C, 1, *kernel), dtype=jnp.float32) * 0.1
        # Channels-last weight for the Pallas kernel: (kT, kH, kW, C)
        conv_w = jnp.transpose(conv_w_torch[:, 0], (1, 2, 3, 0))
        ln_gamma = 1.0 + 0.1 * jax.random.normal(k3, (C,), dtype=jnp.float32)
        ln_beta = 0.1 * jax.random.normal(k4, (C,), dtype=jnp.float32)

        out, thw_out = attention_pool_forward(
            tensor, [T, H, W], conv_w, ln_gamma, ln_beta, stride, padding)
        out = jax.block_until_ready(out)

        ref, thw_ref = _reference(
            tensor, [T, H, W], conv_w_torch, ln_gamma, ln_beta, stride, padding)
        assert thw_out == thw_ref, (thw_out, thw_ref)
        assert out.shape == ref.shape, (out.shape, ref.shape)
        err = float(jnp.max(jnp.abs(out - ref)))
        assert err < 1e-4, err

    root = jax.random.PRNGKey(0)
    ka, kb = jax.random.split(root)
    run_case(ka, B=2, N=2, C=32, T=4, H=4, W=4)   # even spatial dims
    run_case(kb, B=1, N=2, C=32, T=3, H=5, W=6)   # odd/uneven dims (halo edges)
    print("KERNEL_OK")
</pallas_src>

<mosaic_0001>
module attributes {stable_mosaic.version = 11 : i64} {
  func.func @_dwconv3d_ln_kernel(%arg0: i32, %arg1: memref<4x4x4x32xf32, #tpu.memory_space<vmem>>, %arg2: memref<3x3x3x32xf32, #tpu.memory_space<vmem>>, %arg3: memref<1x32xf32, #tpu.memory_space<vmem>>, %arg4: memref<1x32xf32, #tpu.memory_space<vmem>>, %arg5: memref<2x2x2x32xf32, #tpu.memory_space<vmem>>, %arg6: memref<4x6x6x32xf32, #tpu.memory_space<vmem>>) attributes {dimension_semantics = [#tpu.dimension_semantics<parallel>], iteration_bounds = array<i64: 4>, scalar_prefetch = 0 : i64, scratch_operands = 1 : i64, tpu.core_type = #tpu.core_type<tc>, window_params = [{transform_indices = @transform_0, window_bounds = array<i64: 4, 4, 4, 32>}, {pipeline_mode = #tpu.pipeline_mode<synchronous>, transform_indices = @transform_1, window_bounds = array<i64: 3, 3, 3, 32>}, {pipeline_mode = #tpu.pipeline_mode<synchronous>, transform_indices = @transform_2, window_bounds = array<i64: 1, 32>}, {pipeline_mode = #tpu.pipeline_mode<synchronous>, transform_indices = @transform_3, window_bounds = array<i64: 1, 32>}, {transform_indices = @transform_4, window_bounds = array<i64: 2, 2, 2, 32>}]} {
    %cst = arith.constant 0.000000e+00 : f32
    %0 = vector.broadcast %cst : f32 to vector<4x1x6x32xf32>
    %c0 = arith.constant 0 : index
    %c0_0 = arith.constant 0 : index
    %c0_1 = arith.constant 0 : index
    %c0_2 = arith.constant 0 : index
    %1 = vector.load %arg6[%c0, %c0_0, %c0_1, %c0_2] : memref<4x6x6x32xf32, #tpu.memory_space<vmem>>, vector<4x1x6x32xf32>
    tpu.vector_store %arg6[%c0, %c0_0, %c0_1, %c0_2], %0 {strides = array<i32>} : memref<4x6x6x32xf32, #tpu.memory_space<vmem>>, vector<4x1x6x32xf32>,
    %c0_3 = arith.constant 0 : index
    %c5 = arith.constant 5 : index
    %c0_4 = arith.constant 0 : index
    %c0_5 = arith.constant 0 : index
    %2 = vector.load %arg6[%c0_3, %c5, %c0_4, %c0_5] : memref<4x6x6x32xf32, #tpu.memory_space<vmem>>, vector<4x1x6x32xf32>
    tpu.vector_store %arg6[%c0_3, %c5, %c0_4, %c0_5], %0 {strides = array<i32>} : memref<4x6x6x32xf32, #tpu.memory_space<vmem>>, vector<4x1x6x32xf32>,
    %cst_6 = arith.constant 0.000000e+00 : f32
    %3 = vector.broadcast %cst_6 : f32 to vector<4x6x1x32xf32>
    %c0_7 = arith.constant 0 : index
    %c0_8 = arith.constant 0 : index
    %c0_9 = arith.constant 0 : index
    %c0_10 = arith.constant 0 : index
    %4 = vector.load %arg6[%c0_7, %c0_8, %c0_9, %c0_10] : memref<4x6x6x32xf32, #tpu.memory_space<vmem>>, vector<4x6x1x32xf32>
    tpu.vector_store %arg6[%c0_7, %c0_8, %c0_9, %c0_10], %3 {strides = array<i32>} : memref<4x6x6x32xf32, #tpu.memory_space<vmem>>, vector<4x6x1x32xf32>,
    %c0_11 = arith.constant 0 : index
    %c0_12 = arith.constant 0 : index
    %c5_13 = arith.constant 5 : index
    %c0_14 = arith.constant 0 : index
    %5 = vector.load %arg6[%c0_11, %c0_12, %c5_13, %c0_14] : memref<4x6x6x32xf32, #tpu.memory_space<vmem>>, vector<4x6x1x32xf32>
    tpu.vector_store %arg6[%c0_11, %c0_12, %c5_13, %c0_14], %3 {strides = array<i32>} : memref<4x6x6x32xf32, #tpu.memory_space<vmem>>, vector<4x6x1x32xf32>,
    %c0_15 = arith.constant 0 : index
    %c0_16 = arith.constant 0 : index
    %c0_17 = arith.constant 0 : index
    %c0_18 = arith.constant 0 : index
    %6 = vector.load %arg1[%c0_15, %c0_16, %c0_17, %c0_18] : memref<4x4x4x32xf32, #tpu.memory_space<vmem>>, vector<4x4x4x32xf32>
    %c0_19 = arith.constant 0 : index
    %c1 = arith.constant 1 : index
    %c1_20 = arith.constant 1 : index
    %c0_21 = arith.constant 0 : index
    %7 = vector.load %arg6[%c0_19, %c1, %c1_20, %c0_21] : memref<4x6x6x32xf32, #tpu.memory_space<vmem>>, vector<4x4x4x32xf32>
    tpu.vector_store %arg6[%c0_19, %c1, %c1_20, %c0_21], %6 {strides = array<i32>} : memref<4x6x6x32xf32, #tpu.memory_space<vmem>>, vector<4x4x4x32xf32>,
    %c0_22 = arith.constant 0 : index
    %c0_23 = arith.constant 0 : index
    %c0_24 = arith.constant 0 : index
    %c0_25 = arith.constant 0 : index
    %8 = vector.load %arg2[%c0_22, %c0_23, %c0_24, %c0_25] : memref<3x3x3x32xf32, #tpu.memory_space<vmem>>, vector<3x3x3x32xf32>
    %9 = vector.extract_strided_slice %8 {offsets = [0, 0, 0, 0], sizes = [1, 1, 1, 32], strides = [1, 1, 1, 1]} : vector<3x3x3x32xf32> to vector<1x1x1x32xf32>
    %10 = vector.shape_cast %9 : vector<1x1x1x32xf32> to vector<32xf32>
    %11 = vector.extract_strided_slice %8 {offsets = [0, 0, 1, 0], sizes = [1, 1, 1, 32], strides = [1, 1, 1, 1]} : vector<3x3x3x32xf32> to vector<1x1x1x32xf32>
    %12 = vector.shape_cast %11 : vector<1x1x1x32xf32> to vector<32xf32>
    %13 = vector.extract_strided_slice %8 {offsets = [0, 0, 2, 0], sizes = [1, 1, 1, 32], strides = [1, 1, 1, 1]} : vector<3x3x3x32xf32> to vector<1x1x1x32xf32>
    %14 = vector.shape_cast %13 : vector<1x1x1x32xf32> to vector<32xf32>
    %15 = vector.extract_strided_slice %8 {offsets = [0, 1, 0, 0], sizes = [1, 1, 1, 32], strides = [1, 1, 1, 1]} : vector<3x3x3x32xf32> to vector<1x1x1x32xf32>
    %16 = vector.shape_cast %15 : vector<1x1x1x32xf32> to vector<32xf32>
    %17 = vector.extract_strided_slice %8 {offsets = [0, 1, 1, 0], sizes = [1, 1, 1, 32], strides = [1, 1, 1, 1]} : vector<3x3x3x32xf32> to vector<1x1x1x32xf32>
    %18 = vector.shape_cast %17 : vector<1x1x1x32xf32> to vector<32xf32>
    %19 = vector.extract_strided_slice %8 {offsets = [0, 1, 2, 0], sizes = [1, 1, 1, 32], strides = [1, 1, 1, 1]} : vector<3x3x3x32xf32> to vector<1x1x1x32xf32>
    %20 = vector.shape_cast %19 : vector<1x1x1x32xf32> to vector<32xf32>
    %21 = vector.extract_strided_slice %8 {offsets = [0, 2, 0, 0], sizes = [1, 1, 1, 32], strides = [1, 1, 1, 1]} : vector<3x3x3x32xf32> to vector<1x1x1x32xf32>
    %22 = vector.shape_cast %21 : vector<1x1x1x32xf32> to vector<32xf32>
    %23 = vector.extract_strided_slice %8 {offsets = [0, 2, 1, 0], sizes = [1, 1, 1, 32], strides = [1, 1, 1, 1]} : vector<3x3x3x32xf32> to vector<1x1x1x32xf32>
    %24 = vector.shape_cast %23 : vector<1x1x1x32xf32> to vector<32xf32>
    %25 = vector.extract_strided_slice %8 {offsets = [0, 2, 2, 0], sizes = [1, 1, 1, 32], strides = [1, 1, 1, 1]} : vector<3x3x3x32xf32> to vector<1x1x1x32xf32>
    %26 = vector.shape_cast %25 : vector<1x1x1x32xf32> to vector<32xf32>
    %27 = vector.extract_strided_slice %8 {offsets = [1, 0, 0, 0], sizes = [1, 1, 1, 32], strides = [1, 1, 1, 1]} : vector<3x3x3x32xf32> to vector<1x1x1x32xf32>
    %28 = vector.shape_cast %27 : vector<1x1x1x32xf32> to vector<32xf32>
    %29 = vector.extract_strided_slice %8 {offsets = [1, 0, 1, 0], sizes = [1, 1, 1, 32], strides = [1, 1, 1, 1]} : vector<3x3x3x32xf32> to vector<1x1x1x32xf32>
    %30 = vector.shape_cast %29 : vector<1x1x1x32xf32> to vector<32xf32>
    %31 = vector.extract_strided_slice %8 {offsets = [1, 0, 2, 0], sizes = [1, 1, 1, 32], strides = [1, 1, 1, 1]} : vector<3x3x3x32xf32> to vector<1x1x1x32xf32>
    %32 = vector.shape_cast %31 : vector<1x1x1x32xf32> to vector<32xf32>
    %33 = vector.extract_strided_slice %8 {offsets = [1, 1, 0, 0], sizes = [1, 1, 1, 32], strides = [1, 1, 1, 1]} : vector<3x3x3x32xf32> to vector<1x1x1x32xf32>
    %34 = vector.shape_cast %33 : vector<1x1x1x32xf32> to vector<32xf32>
    %35 = vector.extract_strided_slice %8 {offsets = [1, 1, 1, 0], sizes = [1, 1, 1, 32], strides = [1, 1, 1, 1]} : vector<3x3x3x32xf32> to vector<1x1x1x32xf32>
    %36 = vector.shape_cast %35 : vector<1x1x1x32xf32> to vector<32xf32>
    %37 = vector.extract_strided_slice %8 {offsets = [1, 1, 2, 0], sizes = [1, 1, 1, 32], strides = [1, 1, 1, 1]} : vector<3x3x3x32xf32> to vector<1x1x1x32xf32>
    %38 = vector.shape_cast %37 : vector<1x1x1x32xf32> to vector<32xf32>
    %39 = vector.extract_strided_slice %8 {offsets = [1, 2, 0, 0], sizes = [1, 1, 1, 32], strides = [1, 1, 1, 1]} : vector<3x3x3x32xf32> to vector<1x1x1x32xf32>
    %40 = vector.shape_cast %39 : vector<1x1x1x32xf32> to vector<32xf32>
    %41 = vector.extract_strided_slice %8 {offsets = [1, 2, 1, 0], sizes = [1, 1, 1, 32], strides = [1, 1, 1, 1]} : vector<3x3x3x32xf32> to vector<1x1x1x32xf32>
    %42 = vector.shape_cast %41 : vector<1x1x1x32xf32> to vector<32xf32>
    %43 = vector.extract_strided_slice %8 {offsets = [1, 2, 2, 0], sizes = [1, 1, 1, 32], strides = [1, 1, 1, 1]} : vector<3x3x3x32xf32> to vector<1x1x1x32xf32>
    %44 = vector.shape_cast %43 : vector<1x1x1x32xf32> to vector<32xf32>
    %45 = vector.extract_strided_slice %8 {offsets = [2, 0, 0, 0], sizes = [1, 1, 1, 32], strides = [1, 1, 1, 1]} : vector<3x3x3x32xf32> to vector<1x1x1x32xf32>
    %46 = vector.shape_cast %45 : vector<1x1x1x32xf32> to vector<32xf32>
    %47 = vector.extract_strided_slice %8 {offsets = [2, 0, 1, 0], sizes = [1, 1, 1, 32], strides = [1, 1, 1, 1]} : vector<3x3x3x32xf32> to vector<1x1x1x32xf32>
    %48 = vector.shape_cast %47 : vector<1x1x1x32xf32> to vector<32xf32>
    %49 = vector.extract_strided_slice %8 {offsets = [2, 0, 2, 0], sizes = [1, 1, 1, 32], strides = [1, 1, 1, 1]} : vector<3x3x3x32xf32> to vector<1x1x1x32xf32>
    %50 = vector.shape_cast %49 : vector<1x1x1x32xf32> to vector<32xf32>
    %51 = vector.extract_strided_slice %8 {offsets = [2, 1, 0, 0], sizes = [1, 1, 1, 32], strides = [1, 1, 1, 1]} : vector<3x3x3x32xf32> to vector<1x1x1x32xf32>
    %52 = vector.shape_cast %51 : vector<1x1x1x32xf32> to vector<32xf32>
    %53 = vector.extract_strided_slice %8 {offsets = [2, 1, 1, 0], sizes = [1, 1, 1, 32], strides = [1, 1, 1, 1]} : vector<3x3x3x32xf32> to vector<1x1x1x32xf32>
    %54 = vector.shape_cast %53 : vector<1x1x1x32xf32> to vector<32xf32>
    %55 = vector.extract_strided_slice %8 {offsets = [2, 1, 2, 0], sizes = [1, 1, 1, 32], strides = [1, 1, 1, 1]} : vector<3x3x3x32xf32> to vector<1x1x1x32xf32>
    %56 = vector.shape_cast %55 : vector<1x1x1x32xf32> to vector<32xf32>
    %57 = vector.extract_strided_slice %8 {offsets = [2, 2, 0, 0], sizes = [1, 1, 1, 32], strides = [1, 1, 1, 1]} : vector<3x3x3x32xf32> to vector<1x1x1x32xf32>
    %58 = vector.shape_cast %57 : vector<1x1x1x32xf32> to vector<32xf32>
    %59 = vector.extract_strided_slice %8 {offsets = [2, 2, 1, 0], sizes = [1, 1, 1, 32], strides = [1, 1, 1, 1]} : vector<3x3x3x32xf32> to vector<1x1x1x32xf32>
    %60 = vector.shape_cast %59 : vector<1x1x1x32xf32> to vector<32xf32>
    %61 = vector.extract_strided_slice %8 {offsets = [2, 2, 2, 0], sizes = [1, 1, 1, 32], strides = [1, 1, 1, 1]} : vector<3x3x3x32xf32> to vector<1x1x1x32xf32>
    %62 = vector.shape_cast %61 : vector<1x1x1x32xf32> to vector<32xf32>
    %c0_26 = arith.constant 0 : index
    %c0_27 = arith.constant 0 : index
    %63 = vector.load %arg3[%c0_26, %c0_27] : memref<1x32xf32, #tpu.memory_space<vmem>>, vector<1x32xf32>
    %c0_28 = arith.constant 0 : index
    %c0_29 = arith.constant 0 : index
    %64 = vector.load %arg4[%c0_28, %c0_29] : memref<1x32xf32, #tpu.memory_space<vmem>>, vector<1x32xf32>
    %cst_30 = arith.constant 0.000000e+00 : f32
    %65 = vector.broadcast %cst_30 : f32 to vector<1x2x2x32xf32>
    %c0_31 = arith.constant 0 : index
    %c0_32 = arith.constant 0 : index
    %c0_33 = arith.constant 0 : index
    %c0_34 = arith.constant 0 : index
    %66 = tpu.strided_load %arg6[%c0_31, %c0_32, %c0_33, %c0_34] {strides = array<i32: 1, 2, 2, 1>} : memref<4x6x6x32xf32, #tpu.memory_space<vmem>>, vector<1x2x2x32xf32>
    %67 = vector.shape_cast %28 : vector<32xf32> to vector<1x1x1x32xf32>
    %68 = vector.broadcast %67 : vector<1x1x1x32xf32> to vector<1x2x2x32xf32>
    %69 = arith.mulf %66, %68 : vector<1x2x2x32xf32>
    %70 = arith.addf %65, %69 : vector<1x2x2x32xf32>
    %c0_35 = arith.constant 0 : index
    %c0_36 = arith.constant 0 : index
    %c1_37 = arith.constant 1 : index
    %c0_38 = arith.constant 0 : index
    %71 = tpu.strided_load %arg6[%c0_35, %c0_36, %c1_37, %c0_38] {strides = array<i32: 1, 2, 2, 1>} : memref<4x6x6x32xf32, #tpu.memory_space<vmem>>, vector<1x2x2x32xf32>
    %72 = vector.shape_cast %30 : vector<32xf32> to vector<1x1x1x32xf32>
    %73 = vector.broadcast %72 : vector<1x1x1x32xf32> to vector<1x2x2x32xf32>
    %74 = arith.mulf %71, %73 : vector<1x2x2x32xf32>
    %75 = arith.addf %70, %74 : vector<1x2x2x32xf32>
    %c0_39 = arith.constant 0 : index
    %c0_40 = arith.constant 0 : index
    %c2 = arith.constant 2 : index
    %c0_41 = arith.constant 0 : index
    %76 = tpu.strided_load %arg6[%c0_39, %c0_40, %c2, %c0_41] {strides = array<i32: 1, 2, 2, 1>} : memref<4x6x6x32xf32, #tpu.memory_space<vmem>>, vector<1x2x2x32xf32>
    %77 = vector.shape_cast %32 : vector<32xf32> to vector<1x1x1x32xf32>
    %78 = vector.broadcast %77 : vector<1x1x1x32xf32> to vector<1x2x2x32xf32>
    %79 = arith.mulf %76, %78 : vector<1x2x2x32xf32>
    %80 = arith.addf %75, %79 : vector<1x2x2x32xf32>
    %c0_42 = arith.constant 0 : index
    %c1_43 = arith.constant 1 : index
    %c0_44 = arith.constant 0 : index
    %c0_45 = arith.constant 0 : index
    %81 = tpu.strided_load %arg6[%c0_42, %c1_43, %c0_44, %c0_45] {strides = array<i32: 1, 2, 2, 1>} : memref<4x6x6x32xf32, #tpu.memory_space<vmem>>, vector<1x2x2x32xf32>
    %82 = vector.shape_cast %34 : vector<32xf32> to vector<1x1x1x32xf32>
    %83 = vector.broadcast %82 : vector<1x1x1x32xf32> to vector<1x2x2x32xf32>
    %84 = arith.mulf %81, %83 : vector<1x2x2x32xf32>
    %85 = arith.addf %80, %84 : vector<1x2x2x32xf32>
    %c0_46 = arith.constant 0 : index
    %c1_47 = arith.constant 1 : index
    %c1_48 = arith.constant 1 : index
    %c0_49 = arith.constant 0 : index
    %86 = tpu.strided_load %arg6[%c0_46, %c1_47, %c1_48, %c0_49] {strides = array<i32: 1, 2, 2, 1>} : memref<4x6x6x32xf32, #tpu.memory_space<vmem>>, vector<1x2x2x32xf32>
    %87 = vector.shape_cast %36 : vector<32xf32> to vector<1x1x1x32xf32>
    %88 = vector.broadcast %87 : vector<1x1x1x32xf32> to vector<1x2x2x32xf32>
    %89 = arith.mulf %86, %88 : vector<1x2x2x32xf32>
    %90 = arith.addf %85, %89 : vector<1x2x2x32xf32>
    %c0_50 = arith.constant 0 : index
    %c1_51 = arith.constant 1 : index
    %c2_52 = arith.constant 2 : index
    %c0_53 = arith.constant 0 : index
    %91 = tpu.strided_load %arg6[%c0_50, %c1_51, %c2_52, %c0_53] {strides = array<i32: 1, 2, 2, 1>} : memref<4x6x6x32xf32, #tpu.memory_space<vmem>>, vector<1x2x2x32xf32>
    %92 = vector.shape_cast %38 : vector<32xf32> to vector<1x1x1x32xf32>
    %93 = vector.broadcast %92 : vector<1x1x1x32xf32> to vector<1x2x2x32xf32>
    %94 = arith.mulf %91, %93 : vector<1x2x2x32xf32>
    %95 = arith.addf %90, %94 : vector<1x2x2x32xf32>
    %c0_54 = arith.constant 0 : index
    %c2_55 = arith.constant 2 : index
    %c0_56 = arith.constant 0 : index
    %c0_57 = arith.constant 0 : index
    %96 = tpu.strided_load %arg6[%c0_54, %c2_55, %c0_56, %c0_57] {strides = array<i32: 1, 2, 2, 1>} : memref<4x6x6x32xf32, #tpu.memory_space<vmem>>, vector<1x2x2x32xf32>
    %97 = vector.shape_cast %40 : vector<32xf32> to vector<1x1x1x32xf32>
    %98 = vector.broadcast %97 : vector<1x1x1x32xf32> to vector<1x2x2x32xf32>
    %99 = arith.mulf %96, %98 : vector<1x2x2x32xf32>
    %100 = arith.addf %95, %99 : vector<1x2x2x32xf32>
    %c0_58 = arith.constant 0 : index
    %c2_59 = arith.constant 2 : index
    %c1_60 = arith.constant 1 : index
    %c0_61 = arith.constant 0 : index
    %101 = tpu.strided_load %arg6[%c0_58, %c2_59, %c1_60, %c0_61] {strides = array<i32: 1, 2, 2, 1>} : memref<4x6x6x32xf32, #tpu.memory_space<vmem>>, vector<1x2x2x32xf32>
    %102 = vector.shape_cast %42 : vector<32xf32> to vector<1x1x1x32xf32>
    %103 = vector.broadcast %102 : vector<1x1x1x32xf32> to vector<1x2x2x32xf32>
    %104 = arith.mulf %101, %103 : vector<1x2x2x32xf32>
    %105 = arith.addf %100, %104 : vector<1x2x2x32xf32>
    %c0_62 = arith.constant 0 : index
    %c2_63 = arith.constant 2 : index
    %c2_64 = arith.constant 2 : index
    %c0_65 = arith.constant 0 : index
    %106 = tpu.strided_load %arg6[%c0_62, %c2_63, %c2_64, %c0_65] {strides = array<i32: 1, 2, 2, 1>} : memref<4x6x6x32xf32, #tpu.memory_space<vmem>>, vector<1x2x2x32xf32>
    %107 = vector.shape_cast %44 : vector<32xf32> to vector<1x1x1x32xf32>
    %108 = vector.broadcast %107 : vector<1x1x1x32xf32> to vector<1x2x2x32xf32>
    %109 = arith.mulf %106, %108 : vector<1x2x2x32xf32>
    %110 = arith.addf %105, %109 : vector<1x2x2x32xf32>
    %c1_66 = arith.constant 1 : index
    %c0_67 = arith.constant 0 : index
    %c0_68 = arith.constant 0 : index
    %c0_69 = arith.constant 0 : index
    %111 = tpu.strided_load %arg6[%c1_66, %c0_67, %c0_68, %c0_69] {strides = array<i32: 1, 2, 2, 1>} : memref<4x6x6x32xf32, #tpu.memory_space<vmem>>, vector<1x2x2x32xf32>
    %112 = vector.shape_cast %46 : vector<32xf32> to vector<1x1x1x32xf32>
    %113 = vector.broadcast %112 : vector<1x1x1x32xf32> to vector<1x2x2x32xf32>
    %114 = arith.mulf %111, %113 : vector<1x2x2x32xf32>
    %115 = arith.addf %110, %114 : vector<1x2x2x32xf32>
    %c1_70 = arith.constant 1 : index
    %c0_71 = arith.constant 0 : index
    %c1_72 = arith.constant 1 : index
    %c0_73 = arith.constant 0 : index
    %116 = tpu.strided_load %arg6[%c1_70, %c0_71, %c1_72, %c0_73] {strides = array<i32: 1, 2, 2, 1>} : memref<4x6x6x32xf32, #tpu.memory_space<vmem>>, vector<1x2x2x32xf32>
    %117 = vector.shape_cast %48 : vector<32xf32> to vector<1x1x1x32xf32>
    %118 = vector.broadcast %117 : vector<1x1x1x32xf32> to vector<1x2x2x32xf32>
    %119 = arith.mulf %116, %118 : vector<1x2x2x32xf32>
    %120 = arith.addf %115, %119 : vector<1x2x2x32xf32>
    %c1_74 = arith.constant 1 : index
    %c0_75 = arith.constant 0 : index
    %c2_76 = arith.constant 2 : index
    %c0_77 = arith.constant 0 : index
    %121 = tpu.strided_load %arg6[%c1_74, %c0_75, %c2_76, %c0_77] {strides = array<i32: 1, 2, 2, 1>} : memref<4x6x6x32xf32, #tpu.memory_space<vmem>>, vector<1x2x2x32xf32>
    %122 = vector.shape_cast %50 : vector<32xf32> to vector<1x1x1x32xf32>
    %123 = vector.broadcast %122 : vector<1x1x1x32xf32> to vector<1x2x2x32xf32>
    %124 = arith.mulf %121, %123 : vector<1x2x2x32xf32>
    %125 = arith.addf %120, %124 : vector<1x2x2x32xf32>
    %c1_78 = arith.constant 1 : index
    %c1_79 = arith.constant 1 : index
    %c0_80 = arith.constant 0 : index
    %c0_81 = arith.constant 0 : index
    %126 = tpu.strided_load %arg6[%c1_78, %c1_79, %c0_80, %c0_81] {strides = array<i32: 1, 2, 2, 1>} : memref<4x6x6x32xf32, #tpu.memory_space<vmem>>, vector<1x2x2x32xf32>
    %127 = vector.shape_cast %52 : vector<32xf32> to vector<1x1x1x32xf32>
    %128 = vector.broadcast %127 : vector<1x1x1x32xf32> to vector<1x2x2x32xf32>
    %129 = arith.mulf %126, %128 : vector<1x2x2x32xf32>
    %130 = arith.addf %125, %129 : vector<1x2x2x32xf32>
    %c1_82 = arith.constant 1 : index
    %c1_83 = arith.constant 1 : index
    %c1_84 = arith.constant 1 : index
    %c0_85 = arith.constant 0 : index
    %131 = tpu.strided_load %arg6[%c1_82, %c1_83, %c1_84, %c0_85] {strides = array<i32: 1, 2, 2, 1>} : memref<4x6x6x32xf32, #tpu.memory_space<vmem>>, vector<1x2x2x32xf32>
    %132 = vector.shape_cast %54 : vector<32xf32> to vector<1x1x1x32xf32>
    %133 = vector.broadcast %132 : vector<1x1x1x32xf32> to vector<1x2x2x32xf32>
    %134 = arith.mulf %131, %133 : vector<1x2x2x32xf32>
    %135 = arith.addf %130, %134 : vector<1x2x2x32xf32>
    %c1_86 = arith.constant 1 : index
    %c1_87 = arith.constant 1 : index
    %c2_88 = arith.constant 2 : index
    %c0_89 = arith.constant 0 : index
    %136 = tpu.strided_load %arg6[%c1_86, %c1_87, %c2_88, %c0_89] {strides = array<i32: 1, 2, 2, 1>} : memref<4x6x6x32xf32, #tpu.memory_space<vmem>>, vector<1x2x2x32xf32>
    %137 = vector.shape_cast %56 : vector<32xf32> to vector<1x1x1x32xf32>
    %138 = vector.broadcast %137 : vector<1x1x1x32xf32> to vector<1x2x2x32xf32>
    %139 = arith.mulf %136, %138 : vector<1x2x2x32xf32>
    %140 = arith.addf %135, %139 : vector<1x2x2x32xf32>
    %c1_90 = arith.constant 1 : index
    %c2_91 = arith.constant 2 : index
    %c0_92 = arith.constant 0 : index
    %c0_93 = arith.constant 0 : index
    %141 = tpu.strided_load %arg6[%c1_90, %c2_91, %c0_92, %c0_93] {strides = array<i32: 1, 2, 2, 1>} : memref<4x6x6x32xf32, #tpu.memory_space<vmem>>, vector<1x2x2x32xf32>
    %142 = vector.shape_cast %58 : vector<32xf32> to vector<1x1x1x32xf32>
    %143 = vector.broadcast %142 : vector<1x1x1x32xf32> to vector<1x2x2x32xf32>
    %144 = arith.mulf %141, %143 : vector<1x2x2x32xf32>
    %145 = arith.addf %140, %144 : vector<1x2x2x32xf32>
    %c1_94 = arith.constant 1 : index
    %c2_95 = arith.constant 2 : index
    %c1_96 = arith.constant 1 : index
    %c0_97 = arith.constant 0 : index
    %146 = tpu.strided_load %arg6[%c1_94, %c2_95, %c1_96, %c0_97] {strides = array<i32: 1, 2, 2, 1>} : memref<4x6x6x32xf32, #tpu.memory_space<vmem>>, vector<1x2x2x32xf32>
    %147 = vector.shape_cast %60 : vector<32xf32> to vector<1x1x1x32xf32>
    %148 = vector.broadcast %147 : vector<1x1x1x32xf32> to vector<1x2x2x32xf32>
    %149 = arith.mulf %146, %148 : vector<1x2x2x32xf32>
    %150 = arith.addf %145, %149 : vector<1x2x2x32xf32>
    %c1_98 = arith.constant 1 : index
    %c2_99 = arith.constant 2 : index
    %c2_100 = arith.constant 2 : index
    %c0_101 = arith.constant 0 : index
    %151 = tpu.strided_load %arg6[%c1_98, %c2_99, %c2_100, %c0_101] {strides = array<i32: 1, 2, 2, 1>} : memref<4x6x6x32xf32, #tpu.memory_space<vmem>>, vector<1x2x2x32xf32>
    %152 = vector.shape_cast %62 : vector<32xf32> to vector<1x1x1x32xf32>
    %153 = vector.broadcast %152 : vector<1x1x1x32xf32> to vector<1x2x2x32xf32>
    %154 = arith.mulf %151, %153 : vector<1x2x2x32xf32>
    %155 = arith.addf %150, %154 : vector<1x2x2x32xf32>
    %cst_102 = arith.constant dense<0.000000e+00> : vector<1x2x2xf32>
    %156 = vector.multi_reduction <add>, %155, %cst_102 [3] : vector<1x2x2x32xf32> to vector<1x2x2xf32>
    %157 = vector.shape_cast %156 : vector<1x2x2xf32> to vector<1x2x2x1xf32>
    %cst_103 = arith.constant 3.200000e+01 : f32
    %158 = vector.broadcast %cst_103 : f32 to vector<1x2x2x1xf32>
    %159 = arith.divf %157, %158 : vector<1x2x2x1xf32>
    %160 = vector.broadcast %159 : vector<1x2x2x1xf32> to vector<1x2x2x32xf32>
    %161 = arith.subf %155, %160 : vector<1x2x2x32xf32>
    %162 = arith.mulf %161, %161 : vector<1x2x2x32xf32>
    %cst_104 = arith.constant dense<0.000000e+00> : vector<1x2x2xf32>
    %163 = vector.multi_reduction <add>, %162, %cst_104 [3] : vector<1x2x2x32xf32> to vector<1x2x2xf32>
    %164 = vector.shape_cast %163 : vector<1x2x2xf32> to vector<1x2x2x1xf32>
    %cst_105 = arith.constant 3.200000e+01 : f32
    %165 = vector.broadcast %cst_105 : f32 to vector<1x2x2x1xf32>
    %166 = arith.divf %164, %165 : vector<1x2x2x1xf32>
    %cst_106 = arith.constant 9.99999974E-6 : f32
    %167 = vector.broadcast %cst_106 : f32 to vector<1x2x2x1xf32>
    %168 = arith.addf %166, %167 : vector<1x2x2x1xf32>
    %169 = math.rsqrt %168 : vector<1x2x2x1xf32>
    %170 = vector.broadcast %169 : vector<1x2x2x1xf32> to vector<1x2x2x32xf32>
    %171 = arith.mulf %161, %170 : vector<1x2x2x32xf32>
    %172 = vector.shape_cast %63 : vector<1x32xf32> to vector<1x1x1x32xf32>
    %173 = vector.broadcast %172 : vector<1x1x1x32xf32> to vector<1x2x2x32xf32>
    %174 = arith.mulf %171, %173 : vector<1x2x2x32xf32>
    %175 = vector.shape_cast %64 : vector<1x32xf32> to vector<1x1x1x32xf32>
    %176 = vector.broadcast %175 : vector<1x1x1x32xf32> to vector<1x2x2x32xf32>
    %177 = arith.addf %174, %176 : vector<1x2x2x32xf32>
    %c0_107 = arith.constant 0 : index
    %c0_108 = arith.constant 0 : index
    %c0_109 = arith.constant 0 : index
    %c0_110 = arith.constant 0 : index
    %178 = vector.load %arg5[%c0_107, %c0_108, %c0_109, %c0_110] : memref<2x2x2x32xf32, #tpu.memory_space<vmem>>, vector<1x2x2x32xf32>
    tpu.vector_store %arg5[%c0_107, %c0_108, %c0_109, %c0_110], %177 {strides = array<i32>} : memref<2x2x2x32xf32, #tpu.memory_space<vmem>>, vector<1x2x2x32xf32>,
    %cst_111 = arith.constant 0.000000e+00 : f32
    %179 = vector.broadcast %cst_111 : f32 to vector<1x2x2x32xf32>
    %c1_112 = arith.constant 1 : index
    %c0_113 = arith.constant 0 : index
    %c0_114 = arith.constant 0 : index
    %c0_115 = arith.constant 0 : index
    %180 = tpu.strided_load %arg6[%c1_112, %c0_113, %c0_114, %c0_115] {strides = array<i32: 1, 2, 2, 1>} : memref<4x6x6x32xf32, #tpu.memory_space<vmem>>, vector<1x2x2x32xf32>
    %181 = vector.shape_cast %10 : vector<32xf32> to vector<1x1x1x32xf32>
    %182 = vector.broadcast %181 : vector<1x1x1x32xf32> to vector<1x2x2x32xf32>
    %183 = arith.mulf %180, %182 : vector<1x2x2x32xf32>
    %184 = arith.addf %179, %183 : vector<1x2x2x32xf32>
    %c1_116 = arith.constant 1 : index
    %c0_117 = arith.constant 0 : index
    %c1_118 = arith.constant 1 : index
    %c0_119 = arith.constant 0 : index
    %185 = tpu.strided_load %arg6[%c1_116, %c0_117, %c1_118, %c0_119] {strides = array<i32: 1, 2, 2, 1>} : memref<4x6x6x32xf32, #tpu.memory_space<vmem>>, vector<1x2x2x32xf32>
    %186 = vector.shape_cast %12 : vector<32xf32> to vector<1x1x1x32xf32>
    %187 = vector.broadcast %186 : vector<1x1x1x32xf32> to vector<1x2x2x32xf32>
    %188 = arith.mulf %185, %187 : vector<1x2x2x32xf32>
    %189 = arith.addf %184, %188 : vector<1x2x2x32xf32>
    %c1_120 = arith.constant 1 : index
    %c0_121 = arith.constant 0 : index
    %c2_122 = arith.constant 2 : index
    %c0_123 = arith.constant 0 : index
    %190 = tpu.strided_load %arg6[%c1_120, %c0_121, %c2_122, %c0_123] {strides = array<i32: 1, 2, 2, 1>} : memref<4x6x6x32xf32, #tpu.memory_space<vmem>>, vector<1x2x2x32xf32>
    %191 = vector.shape_cast %14 : vector<32xf32> to vector<1x1x1x32xf32>
    %192 = vector.broadcast %191 : vector<1x1x1x32xf32> to vector<1x2x2x32xf32>
    %193 = arith.mulf %190, %192 : vector<1x2x2x32xf32>
    %194 = arith.addf %189, %193 : vector<1x2x2x32xf32>
    %c1_124 = arith.constant 1 : index
    %c1_125 = arith.constant 1 : index
    %c0_126 = arith.constant 0 : index
    %c0_127 = arith.constant 0 : index
    %195 = tpu.strided_load %arg6[%c1_124, %c1_125, %c0_126, %c0_127] {strides = array<i32: 1, 2, 2, 1>} : memref<4x6x6x32xf32, #tpu.memory_space<vmem>>, vector<1x2x2x32xf32>
    %196 = vector.shape_cast %16 : vector<32xf32> to vector<1x1x1x32xf32>
    %197 = vector.broadcast %196 : vector<1x1x1x32xf32> to vector<1x2x2x32xf32>
    %198 = arith.mulf %195, %197 : vector<1x2x2x32xf32>
    %199 = arith.addf %194, %198 : vector<1x2x2x32xf32>
    %c1_128 = arith.constant 1 : index
    %c1_129 = arith.constant 1 : index
    %c1_130 = arith.constant 1 : index
    %c0_131 = arith.constant 0 : index
    %200 = tpu.strided_load %arg6[%c1_128, %c1_129, %c1_130, %c0_131] {strides = array<i32: 1, 2, 2, 1>} : memref<4x6x6x32xf32, #tpu.memory_space<vmem>>, vector<1x2x2x32xf32>
    %201 = vector.shape_cast %18 : vector<32xf32> to vector<1x1x1x32xf32>
    %202 = vector.broadcast %201 : vector<1x1x1x32xf32> to vector<1x2x2x32xf32>
    %203 = arith.mulf %200, %202 : vector<1x2x2x32xf32>
    %204 = arith.addf %199, %203 : vector<1x2x2x32xf32>
    %c1_132 = arith.constant 1 : index
    %c1_133 = arith.constant 1 : index
    %c2_134 = arith.constant 2 : index
    %c0_135 = arith.constant 0 : index
    %205 = tpu.strided_load %arg6[%c1_132, %c1_133, %c2_134, %c0_135] {strides = array<i32: 1, 2, 2, 1>} : memref<4x6x6x32xf32, #tpu.memory_space<vmem>>, vector<1x2x2x32xf32>
    %206 = vector.shape_cast %20 : vector<32xf32> to vector<1x1x1x32xf32>
    %207 = vector.broadcast %206 : vector<1x1x1x32xf32> to vector<1x2x2x32xf32>
    %208 = arith.mulf %205, %207 : vector<1x2x2x32xf32>
    %209 = arith.addf %204, %208 : vector<1x2x2x32xf32>
    %c1_136 = arith.constant 1 : index
    %c2_137 = arith.constant 2 : index
    %c0_138 = arith.constant 0 : index
    %c0_139 = arith.constant 0 : index
    %210 = tpu.strided_load %arg6[%c1_136, %c2_137, %c0_138, %c0_139] {strides = array<i32: 1, 2, 2, 1>} : memref<4x6x6x32xf32, #tpu.memory_space<vmem>>, vector<1x2x2x32xf32>
    %211 = vector.shape_cast %22 : vector<32xf32> to vector<1x1x1x32xf32>
    %212 = vector.broadcast %211 : vector<1x1x1x32xf32> to vector<1x2x2x32xf32>
    %213 = arith.mulf %210, %212 : vector<1x2x2x32xf32>
    %214 = arith.addf %209, %213 : vector<1x2x2x32xf32>
    %c1_140 = arith.constant 1 : index
    %c2_141 = arith.constant 2 : index
    %c1_142 = arith.constant 1 : index
    %c0_143 = arith.constant 0 : index
    %215 = tpu.strided_load %arg6[%c1_140, %c2_141, %c1_142, %c0_143] {strides = array<i32: 1, 2, 2, 1>} : memref<4x6x6x32xf32, #tpu.memory_space<vmem>>, vector<1x2x2x32xf32>
    %216 = vector.shape_cast %24 : vector<32xf32> to vector<1x1x1x32xf32>
    %217 = vector.broadcast %216 : vector<1x1x1x32xf32> to vector<1x2x2x32xf32>
    %218 = arith.mulf %215, %217 : vector<1x2x2x32xf32>
    %219 = arith.addf %214, %218 : vector<1x2x2x32xf32>
    %c1_144 = arith.constant 1 : index
    %c2_145 = arith.constant 2 : index
    %c2_146 = arith.constant 2 : index
    %c0_147 = arith.constant 0 : index
    %220 = tpu.strided_load %arg6[%c1_144, %c2_145, %c2_146, %c0_147] {strides = array<i32: 1, 2, 2, 1>} : memref<4x6x6x32xf32, #tpu.memory_space<vmem>>, vector<1x2x2x32xf32>
    %221 = vector.shape_cast %26 : vector<32xf32> to vector<1x1x1x32xf32>
    %222 = vector.broadcast %221 : vector<1x1x1x32xf32> to vector<1x2x2x32xf32>
    %223 = arith.mulf %220, %222 : vector<1x2x2x32xf32>
    %224 = arith.addf %219, %223 : vector<1x2x2x32xf32>
    %c2_148 = arith.constant 2 : index
    %c0_149 = arith.constant 0 : index
    %c0_150 = arith.constant 0 : index
    %c0_151 = arith.constant 0 : index
    %225 = tpu.strided_load %arg6[%c2_148, %c0_149, %c0_150, %c0_151] {strides = array<i32: 1, 2, 2, 1>} : memref<4x6x6x32xf32, #tpu.memory_space<vmem>>, vector<1x2x2x32xf32>
    %226 = vector.shape_cast %28 : vector<32xf32> to vector<1x1x1x32xf32>
    %227 = vector.broadcast %226 : vector<1x1x1x32xf32> to vector<1x2x2x32xf32>
    %228 = arith.mulf %225, %227 : vector<1x2x2x32xf32>
    %229 = arith.addf %224, %228 : vector<1x2x2x32xf32>
    %c2_152 = arith.constant 2 : index
    %c0_153 = arith.constant 0 : index
    %c1_154 = arith.constant 1 : index
    %c0_155 = arith.constant 0 : index
    %230 = tpu.strided_load %arg6[%c2_152, %c0_153, %c1_154, %c0_155] {strides = array<i32: 1, 2, 2, 1>} : memref<4x6x6x32xf32, #tpu.memory_space<vmem>>, vector<1x2x2x32xf32>
    %231 = vector.shape_cast %30 : vector<32xf32> to vector<1x1x1x32xf32>
    %232 = vector.broadcast %231 : vector<1x1x1x32xf32> to vector<1x2x2x32xf32>
    %233 = arith.mulf %230, %232 : vector<1x2x2x32xf32>
    %234 = arith.addf %229, %233 : vector<1x2x2x32xf32>
    %c2_156 = arith.constant 2 : index
    %c0_157 = arith.constant 0 : index
    %c2_158 = arith.constant 2 : index
    %c0_159 = arith.constant 0 : index
    %235 = tpu.strided_load %arg6[%c2_156, %c0_157, %c2_158, %c0_159] {strides = array<i32: 1, 2, 2, 1>} : memref<4x6x6x32xf32, #tpu.memory_space<vmem>>, vector<1x2x2x32xf32>
    %236 = vector.shape_cast %32 : vector<32xf32> to vector<1x1x1x32xf32>
    %237 = vector.broadcast %236 : vector<1x1x1x32xf32> to vector<1x2x2x32xf32>
    %238 = arith.mulf %235, %237 : vector<1x2x2x32xf32>
    %239 = arith.addf %234, %238 : vector<1x2x2x32xf32>
    %c2_160 = arith.constant 2 : index
    %c1_161 = arith.constant 1 : index
    %c0_162 = arith.constant 0 : index
    %c0_163 = arith.constant 0 : index
    %240 = tpu.strided_load %arg6[%c2_160, %c1_161, %c0_162, %c0_163] {strides = array<i32: 1, 2, 2, 1>} : memref<4x6x6x32xf32, #tpu.memory_space<vmem>>, vector<1x2x2x32xf32>
    %241 = vector.shape_cast %34 : vector<32xf32> to vector<1x1x1x32xf32>
    %242 = vector.broadcast %241 : vector<1x1x1x32xf32> to vector<1x2x2x32xf32>
    %243 = arith.mulf %240, %242 : vector<1x2x2x32xf32>
    %244 = arith.addf %239, %243 : vector<1x2x2x32xf32>
    %c2_164 = arith.constant 2 : index
    %c1_165 = arith.constant 1 : index
    %c1_166 = arith.constant 1 : index
    %c0_167 = arith.constant 0 : index
    %245 = tpu.strided_load %arg6[%c2_164, %c1_165, %c1_166, %c0_167] {strides = array<i32: 1, 2, 2, 1>} : memref<4x6x6x32xf32, #tpu.memory_space<vmem>>, vector<1x2x2x32xf32>
    %246 = vector.shape_cast %36 : vector<32xf32> to vector<1x1x1x32xf32>
    %247 = vector.broadcast %246 : vector<1x1x1x32xf32> to vector<1x2x2x32xf32>
    %248 = arith.mulf %245, %247 : vector<1x2x2x32xf32>
    %249 = arith.addf %244, %248 : vector<1x2x2x32xf32>
    %c2_168 = arith.constant 2 : index
    %c1_169 = arith.constant 1 : index
    %c2_170 = arith.constant 2 : index
    %c0_171 = arith.constant 0 : index
    %250 = tpu.strided_load %arg6[%c2_168, %c1_169, %c2_170, %c0_171] {strides = array<i32: 1, 2, 2, 1>} : memref<4x6x6x32xf32, #tpu.memory_space<vmem>>, vector<1x2x2x32xf32>
    %251 = vector.shape_cast %38 : vector<32xf32> to vector<1x1x1x32xf32>
    %252 = vector.broadcast %251 : vector<1x1x1x32xf32> to vector<1x2x2x32xf32>
    %253 = arith.mulf %250, %252 : vector<1x2x2x32xf32>
    %254 = arith.addf %249, %253 : vector<1x2x2x32xf32>
    %c2_172 = arith.constant 2 : index
    %c2_173 = arith.constant 2 : index
    %c0_174 = arith.constant 0 : index
    %c0_175 = arith.constant 0 : index
    %255 = tpu.strided_load %arg6[%c2_172, %c2_173, %c0_174, %c0_175] {strides = array<i32: 1, 2, 2, 1>} : memref<4x6x6x32xf32, #tpu.memory_space<vmem>>, vector<1x2x2x32xf32>
    %256 = vector.shape_cast %40 : vector<32xf32> to vector<1x1x1x32xf32>
    %257 = vector.broadcast %256 : vector<1x1x1x32xf32> to vector<1x2x2x32xf32>
    %258 = arith.mulf %255, %257 : vector<1x2x2x32xf32>
    %259 = arith.addf %254, %258 : vector<1x2x2x32xf32>
    %c2_176 = arith.constant 2 : index
    %c2_177 = arith.constant 2 : index
    %c1_178 = arith.constant 1 : index
    %c0_179 = arith.constant 0 : index
    %260 = tpu.strided_load %arg6[%c2_176, %c2_177, %c1_178, %c0_179] {strides = array<i32: 1, 2, 2, 1>} : memref<4x6x6x32xf32, #tpu.memory_space<vmem>>, vector<1x2x2x32xf32>
    %261 = vector.shape_cast %42 : vector<32xf32> to vector<1x1x1x32xf32>
    %262 = vector.broadcast %261 : vector<1x1x1x32xf32> to vector<1x2x2x32xf32>
    %263 = arith.mulf %260, %262 : vector<1x2x2x32xf32>
    %264 = arith.addf %259, %263 : vector<1x2x2x32xf32>
    %c2_180 = arith.constant 2 : index
    %c2_181 = arith.constant 2 : index
    %c2_182 = arith.constant 2 : index
    %c0_183 = arith.constant 0 : index
    %265 = tpu.strided_load %arg6[%c2_180, %c2_181, %c2_182, %c0_183] {strides = array<i32: 1, 2, 2, 1>} : memref<4x6x6x32xf32, #tpu.memory_space<vmem>>, vector<1x2x2x32xf32>
    %266 = vector.shape_cast %44 : vector<32xf32> to vector<1x1x1x32xf32>
    %267 = vector.broadcast %266 : vector<1x1x1x32xf32> to vector<1x2x2x32xf32>
    %268 = arith.mulf %265, %267 : vector<1x2x2x32xf32>
    %269 = arith.addf %264, %268 : vector<1x2x2x32xf32>
    %c3 = arith.constant 3 : index
    %c0_184 = arith.constant 0 : index
    %c0_185 = arith.constant 0 : index
    %c0_186 = arith.constant 0 : index
    %270 = tpu.strided_load %arg6[%c3, %c0_184, %c0_185, %c0_186] {strides = array<i32: 1, 2, 2, 1>} : memref<4x6x6x32xf32, #tpu.memory_space<vmem>>, vector<1x2x2x32xf32>
    %271 = vector.shape_cast %46 : vector<32xf32> to vector<1x1x1x32xf32>
    %272 = vector.broadcast %271 : vector<1x1x1x32xf32> to vector<1x2x2x32xf32>
    %273 = arith.mulf %270, %272 : vector<1x2x2x32xf32>
    %274 = arith.addf %269, %273 : vector<1x2x2x32xf32>
    %c3_187 = arith.constant 3 : index
    %c0_188 = arith.constant 0 : index
    %c1_189 = arith.constant 1 : index
    %c0_190 = arith.constant 0 : index
    %275 = tpu.strided_load %arg6[%c3_187, %c0_188, %c1_189, %c0_190] {strides = array<i32: 1, 2, 2, 1>} : memref<4x6x6x32xf32, #tpu.memory_space<vmem>>, vector<1x2x2x32xf32>
    %276 = vector.shape_cast %48 : vector<32xf32> to vector<1x1x1x32xf32>
    %277 = vector.broadcast %276 : vector<1x1x1x32xf32> to vector<1x2x2x32xf32>
    %278 = arith.mulf %275, %277 : vector<1x2x2x32xf32>
    %279 = arith.addf %274, %278 : vector<1x2x2x32xf32>
    %c3_191 = arith.constant 3 : index
    %c0_192 = arith.constant 0 : index
    %c2_193 = arith.constant 2 : index
    %c0_194 = arith.constant 0 : index
    %280 = tpu.strided_load %arg6[%c3_191, %c0_192, %c2_193, %c0_194] {strides = array<i32: 1, 2, 2, 1>} : memref<4x6x6x32xf32, #tpu.memory_space<vmem>>, vector<1x2x2x32xf32>
    %281 = vector.shape_cast %50 : vector<32xf32> to vector<1x1x1x32xf32>
    %282 = vector.broadcast %281 : vector<1x1x1x32xf32> to vector<1x2x2x32xf32>
    %283 = arith.mulf %280, %282 : vector<1x2x2x32xf32>
    %284 = arith.addf %279, %283 : vector<1x2x2x32xf32>
    %c3_195 = arith.constant 3 : index
    %c1_196 = arith.constant 1 : index
    %c0_197 = arith.constant 0 : index
    %c0_198 = arith.constant 0 : index
    %285 = tpu.strided_load %arg6[%c3_195, %c1_196, %c0_197, %c0_198] {strides = array<i32: 1, 2, 2, 1>} : memref<4x6x6x32xf32, #tpu.memory_space<vmem>>, vector<1x2x2x32xf32>
    %286 = vector.shape_cast %52 : vector<32xf32> to vector<1x1x1x32xf32>
    %287 = vector.broadcast %286 : vector<1x1x1x32xf32> to vector<1x2x2x32xf32>
    %288 = arith.mulf %285, %287 : vector<1x2x2x32xf32>
    %289 = arith.addf %284, %288 : vector<1x2x2x32xf32>
    %c3_199 = arith.constant 3 : index
    %c1_200 = arith.constant 1 : index
    %c1_201 = arith.constant 1 : index
    %c0_202 = arith.constant 0 : index
    %290 = tpu.strided_load %arg6[%c3_199, %c1_200, %c1_201, %c0_202] {strides = array<i32: 1, 2, 2, 1>} : memref<4x6x6x32xf32, #tpu.memory_space<vmem>>, vector<1x2x2x32xf32>
    %291 = vector.shape_cast %54 : vector<32xf32> to vector<1x1x1x32xf32>
    %292 = vector.broadcast %291 : vector<1x1x1x32xf32> to vector<1x2x2x32xf32>
    %293 = arith.mulf %290, %292 : vector<1x2x2x32xf32>
    %294 = arith.addf %289, %293 : vector<1x2x2x32xf32>
    %c3_203 = arith.constant 3 : index
    %c1_204 = arith.constant 1 : index
    %c2_205 = arith.constant 2 : index
    %c0_206 = arith.constant 0 : index
    %295 = tpu.strided_load %arg6[%c3_203, %c1_204, %c2_205, %c0_206] {strides = array<i32: 1, 2, 2, 1>} : memref<4x6x6x32xf32, #tpu.memory_space<vmem>>, vector<1x2x2x32xf32>
    %296 = vector.shape_cast %56 : vector<32xf32> to vector<1x1x1x32xf32>
    %297 = vector.broadcast %296 : vector<1x1x1x32xf32> to vector<1x2x2x32xf32>
    %298 = arith.mulf %295, %297 : vector<1x2x2x32xf32>
    %299 = arith.addf %294, %298 : vector<1x2x2x32xf32>
    %c3_207 = arith.constant 3 : index
    %c2_208 = arith.constant 2 : index
    %c0_209 = arith.constant 0 : index
    %c0_210 = arith.constant 0 : index
    %300 = tpu.strided_load %arg6[%c3_207, %c2_208, %c0_209, %c0_210] {strides = array<i32: 1, 2, 2, 1>} : memref<4x6x6x32xf32, #tpu.memory_space<vmem>>, vector<1x2x2x32xf32>
    %301 = vector.shape_cast %58 : vector<32xf32> to vector<1x1x1x32xf32>
    %302 = vector.broadcast %301 : vector<1x1x1x32xf32> to vector<1x2x2x32xf32>
    %303 = arith.mulf %300, %302 : vector<1x2x2x32xf32>
    %304 = arith.addf %299, %303 : vector<1x2x2x32xf32>
    %c3_211 = arith.constant 3 : index
    %c2_212 = arith.constant 2 : index
    %c1_213 = arith.constant 1 : index
    %c0_214 = arith.constant 0 : index
    %305 = tpu.strided_load %arg6[%c3_211, %c2_212, %c1_213, %c0_214] {strides = array<i32: 1, 2, 2, 1>} : memref<4x6x6x32xf32, #tpu.memory_space<vmem>>, vector<1x2x2x32xf32>
    %306 = vector.shape_cast %60 : vector<32xf32> to vector<1x1x1x32xf32>
    %307 = vector.broadcast %306 : vector<1x1x1x32xf32> to vector<1x2x2x32xf32>
    %308 = arith.mulf %305, %307 : vector<1x2x2x32xf32>
    %309 = arith.addf %304, %308 : vector<1x2x2x32xf32>
    %c3_215 = arith.constant 3 : index
    %c2_216 = arith.constant 2 : index
    %c2_217 = arith.constant 2 : index
    %c0_218 = arith.constant 0 : index
    %310 = tpu.strided_load %arg6[%c3_215, %c2_216, %c2_217, %c0_218] {strides = array<i32: 1, 2, 2, 1>} : memref<4x6x6x32xf32, #tpu.memory_space<vmem>>, vector<1x2x2x32xf32>
    %311 = vector.shape_cast %62 : vector<32xf32> to vector<1x1x1x32xf32>
    %312 = vector.broadcast %311 : vector<1x1x1x32xf32> to vector<1x2x2x32xf32>
    %313 = arith.mulf %310, %312 : vector<1x2x2x32xf32>
    %314 = arith.addf %309, %313 : vector<1x2x2x32xf32>
    %cst_219 = arith.constant dense<0.000000e+00> : vector<1x2x2xf32>
    %315 = vector.multi_reduction <add>, %314, %cst_219 [3] : vector<1x2x2x32xf32> to vector<1x2x2xf32>
    %316 = vector.shape_cast %315 : vector<1x2x2xf32> to vector<1x2x2x1xf32>
    %cst_220 = arith.constant 3.200000e+01 : f32
    %317 = vector.broadcast %cst_220 : f32 to vector<1x2x2x1xf32>
    %318 = arith.divf %316, %317 : vector<1x2x2x1xf32>
    %319 = vector.broadcast %318 : vector<1x2x2x1xf32> to vector<1x2x2x32xf32>
    %320 = arith.subf %314, %319 : vector<1x2x2x32xf32>
    %321 = arith.mulf %320, %320 : vector<1x2x2x32xf32>
    %cst_221 = arith.constant dense<0.000000e+00> : vector<1x2x2xf32>
    %322 = vector.multi_reduction <add>, %321, %cst_221 [3] : vector<1x2x2x32xf32> to vector<1x2x2xf32>
    %323 = vector.shape_cast %322 : vector<1x2x2xf32> to vector<1x2x2x1xf32>
    %cst_222 = arith.constant 3.200000e+01 : f32
    %324 = vector.broadcast %cst_222 : f32 to vector<1x2x2x1xf32>
    %325 = arith.divf %323, %324 : vector<1x2x2x1xf32>
    %cst_223 = arith.constant 9.99999974E-6 : f32
    %326 = vector.broadcast %cst_223 : f32 to vector<1x2x2x1xf32>
    %327 = arith.addf %325, %326 : vector<1x2x2x1xf32>
    %328 = math.rsqrt %327 : vector<1x2x2x1xf32>
    %329 = vector.broadcast %328 : vector<1x2x2x1xf32> to vector<1x2x2x32xf32>
    %330 = arith.mulf %320, %329 : vector<1x2x2x32xf32>
    %331 = vector.shape_cast %63 : vector<1x32xf32> to vector<1x1x1x32xf32>
    %332 = vector.broadcast %331 : vector<1x1x1x32xf32> to vector<1x2x2x32xf32>
    %333 = arith.mulf %330, %332 : vector<1x2x2x32xf32>
    %334 = vector.shape_cast %64 : vector<1x32xf32> to vector<1x1x1x32xf32>
    %335 = vector.broadcast %334 : vector<1x1x1x32xf32> to vector<1x2x2x32xf32>
    %336 = arith.addf %333, %335 : vector<1x2x2x32xf32>
    %c1_224 = arith.constant 1 : index
    %c0_225 = arith.constant 0 : index
    %c0_226 = arith.constant 0 : index
    %c0_227 = arith.constant 0 : index
    %337 = vector.load %arg5[%c1_224, %c0_225, %c0_226, %c0_227] : memref<2x2x2x32xf32, #tpu.memory_space<vmem>>, vector<1x2x2x32xf32>
    tpu.vector_store %arg5[%c1_224, %c0_225, %c0_226, %c0_227], %336 {strides = array<i32>} : memref<2x2x2x32xf32, #tpu.memory_space<vmem>>, vector<1x2x2x32xf32>,
    return
  }
  func.func @transform_0(%arg0: i32) -> (i32, i32, i32, i32) {
    %c0_i32 = arith.constant 0 : i32
    %c0_i32_0 = arith.constant 0 : i32
    %c0_i32_1 = arith.constant 0 : i32
    %c0_i32_2 = arith.constant 0 : i32
    return %arg0, %c0_i32, %c0_i32_0, %c0_i32_1 : i32, i32, i32, i32
  }
  func.func @transform_1(%arg0: i32) -> (i32, i32, i32, i32) {
    %c0_i32 = arith.constant 0 : i32
    %c0_i32_0 = arith.constant 0 : i32
    %c0_i32_1 = arith.constant 0 : i32
    %c0_i32_2 = arith.constant 0 : i32
    %c0_i32_3 = arith.constant 0 : i32
    return %c0_i32, %c0_i32_0, %c0_i32_1, %c0_i32_2 : i32, i32, i32, i32
  }
  func.func @transform_2(%arg0: i32) -> (i32, i32) {
    %c0_i32 = arith.constant 0 : i32
    %c0_i32_0 = arith.constant 0 : i32
    %c0_i32_1 = arith.constant 0 : i32
    return %c0_i32, %c0_i32_0 : i32, i32
  }
  func.func @transform_3(%arg0: i32) -> (i32, i32) {
    %c0_i32 = arith.constant 0 : i32
    %c0_i32_0 = arith.constant 0 : i32
    %c0_i32_1 = arith.constant 0 : i32
    return %c0_i32, %c0_i32_0 : i32, i32
  }
  func.func @transform_4(%arg0: i32) -> (i32, i32, i32, i32) {
    %c0_i32 = arith.constant 0 : i32
    %c0_i32_0 = arith.constant 0 : i32
    %c0_i32_1 = arith.constant 0 : i32
    %c0_i32_2 = arith.constant 0 : i32
    return %arg0, %c0_i32, %c0_i32_0, %c0_i32_1 : i32, i32, i32, i32
  }
}

</mosaic_0001>

<bundles_post_ra>
// kernel: tpu_custom_call.1
= control target key start
LH: loop header
LB: loop body
LE: loop exit
PB: predicated region body
PF: predicated region fallthrough
CT: control target
= control target key end

     0   :  { %9 = vsyncpa [#allocation4], 0  ;;  %s1679_s0 = inlined_call_operand.hbm [shape: f32[16,4,4,32], index: 0, kind: input, shape index: {}]   ;;  %s1680_s1 = inlined_call_operand.hbm [shape: f32[3,3,3,32], index: 1, kind: input, shape index: {}]   ;;  %s1681_s2 = inlined_call_operand.vmem [shape: f32[1,32], index: 2, kind: input, shape index: {}]   ;;  %s1682_s3 = inlined_call_operand.vmem [shape: f32[1,32], index: 3, kind: input, shape index: {}]   ;;  %s1683_s4 = inlined_call_operand.hbm [shape: f32[8,2,2,32], index: 4, kind: output, shape index: {}]  }
   0x1   :  { %11 = vsyncpa [#allocation4 + $0x1], 0 }
   0x2   :  { %12 = vsyncpa [#allocation7], 0 }
   0x3   :  { %13 = vsyncpa [#allocation5], 0 }
   0x4   :  { %15 = vsyncpa [#allocation5 + $0x1], 0  ;;  %s1242_s15 = smov 0   ;;  %s1244_s16 = smov 0  }
   0x5   :  { %s1246_s17 = smov 0   ;;  %s1248_s18 = smov 0  }
   0x6 LB: > { %s1263_s19 = sadd.s32 4294967295, %s1208_s18   ;;  %s979_s20 = sadd.s32 4294967294, %s1208_s18   ;;  %s1208_s18 = sphi %s1248_s18, %s1692_s18   ;;  %s1204_s17 = sphi %s1246_s17, %s1691_s17   ;;  %s1200_s16 = sphi %s1244_s16, %s1690_s16   ;;  %s1196_s15 = sphi %s1242_s15, %s1689_s15  }
   0x7   : > { %p41_p0 = scmp.ne.s32.totalorder %s1200_s16, %s1196_s15  ;;  %p42_p1 = scmp.eq.s32.totalorder %s1263_s19, 0 }
   0x8   : > { %p128_p2 = scmp.eq.s32.totalorder %s1263_s19, 3  ;;  %p134_p3 = scmp.eq.s32.totalorder %s979_s20, 3 }
   0x9   : > { %p1272_p4 = por %p42_p1, %p41_p0  ;;  %p980_p5 = scmp.ge.s32.totalorder %s1208_s18, 1 }
   0xa   : > { %p1277_p6 = por %p134_p3, %p41_p0  ;;  %p141_p7 = scmp.lt.s32.totalorder %s1208_s18, 5 }
   0xb   : > { %s152_s25 = sshll.u32 %s1680_s1, 4  ;;  %s1210_s27 = smov [#allocation6]   ;;  %s153_s25 = int_to_ptr.hbm [resolvable:$true] %s152_s25 }
   0xc   : > { %p1285_p8 = pnand %p980_p5, %p141_p7  ;;  %s154_s28 = sshll.u32 %s1210_s27, 4  ;;  %s155_s28 = int_to_ptr.vmem [resolvable:$true] %s154_s28 }
   0xd   : > { %s1294_s29 = sadd.s32 1, %s1208_s18   ;;  %s1211_s30 = smov 64  }
   0xe   : > { %p1011_p9 = pneg %p1285_p8  ;;  %s1212_s5 = smov 4  }
   0xf   : > { %s25_s6 = ssub.s32 %s1208_s18, %s1294_s29  ;;  %s28_s7 = sadd.s32 1, %s1204_s17 }
  0x10   : > { %p1012_p10 = pnand %p1011_p9, %p42_p1  ;;  %p26_p11 = scmp.eq.s32.totalorder %s25_s6, 0 }
  0x11   : > { %p35_p12 = scmp.ne.s32.totalorder %s1204_s17, %s1200_s16  ;;  %p36_p13 = scmp.eq.s32.totalorder %s1208_s18, 0 }
  0x12   : > { %1014 = dma.hbm_to_vmem [thread:$0]  (!%p1012_p10), %s153_s25, 576, %s155_s28, [#allocation7], %s1211_s30, %s1211_s30, %s1212_s5  }
  0x13   : > { %s1306_s8 = scalar_select %p26_p11, %s1204_s17, %s28_s7  }
  0x14   : > { %p1310_p0 = por %p128_p2, %p35_p12  ;;  %p1024_p3 = scmp.lt.s32.totalorder %s1208_s18, 4 }
  0x15   : > { %s174_s10 = sand.u32 1, %s1204_s17   ;;  %s1000_s11 = sshll.u32 %s1208_s18, 6 }
  0x16   : > { %p37_p5 = por %p36_p13, %p35_p12  ;;  %s983_s12 = sshll.u32 %s174_s10, 6 }
  0x17   : > { %s184_s20 = scalar_lea.hbm %s1679_s0, %s1000_s11  ;;  %s178_s24 = scalar_lea.vmem [#allocation3], %s983_s12 }
  0x18   : > { %s185_s23 = sshll.u32 %s184_s20, 4  ;;  %s187_s25 = sshll.u32 %s178_s24, 4  ;;  %s186_s23 = int_to_ptr.hbm [resolvable:$true] %s185_s23  ;;  %s188_s25 = int_to_ptr.vmem [resolvable:$true] %s187_s25 }
  0x19   : > { %p1320_p7 = pnand %p1024_p3, %p37_p5  ;;  %s175_s28 = scalar_lea.sflag [#allocation4], %s174_s10 }
  0x1a   : > { %s1108_s6 = sshra.s32 %s186_s23, 4  ;;  %s1115_s12 = scalar_lea.hbm %s1679_s0, 256  ;;  %s1109_s6 = int_to_ptr.hbm [resolvable:$true] %s1108_s6 }
  0x1b   : > { %s1110_s7 = scalar_lea.hbm %s1109_s6, 64  ;;  %p1112_p9 = pneg %p1320_p7 }
  0x1c   : > { %p1111_p2 = scmp.ne.s32.totalorder %s1109_s6, %s1110_s7  ;;  %p1116_p12 = scmp.lt.s32.totalorder %s1109_s6, %s1679_s0 }
  0x1d   : > { %p1117_p13 = scmp.lt.s32.totalorder %s1115_s12, %s1110_s7 }
  0x1e   : > { %p1113_p10 = pnand %p1112_p9, %p1111_p2 }
  0x1f   : > { %p1118_p3 = por %p1117_p13, %p1116_p12 }
  0x20   : > { %p1114_p11 = pneg %p1113_p10 }
  0x22   : > { %p1119_p5 = pnand %p1118_p3, %p1114_p11 }
  0x24   : > { %1122 = shalt.err (!%p1119_p5)
}
  0x25   : > { %1018 = dma.hbm_to_vmem [thread:$0]  (!%p1320_p7), %s186_s23, 1024, %s188_s25, %s175_s28, %s1211_s30, %s1211_s30, %s1212_s5  }
  0x26   : > { %199 = sbr.rel (%p1285_p8) target bundleno = 435 (0x1b3), region = 36  ;;  %s1340_s10 = sand.u32 (!%p1285_p8), 1, %s1200_s16  }
  0x27   : > { %s988_s24 = sshll.u32 (!%p1285_p8), %s1340_s10, 6  ;;  %s202_s6 = scalar_lea.sflag (!%p1285_p8), [#allocation4], %s1340_s10 }
  0x28   : > { %s1344_s7 = scalar_lea.vmem (!%p1285_p8), [#allocation3], %s988_s24 }
  0x2b   : > { %1183 = dma.done.wait (%p1272_p4), %s202_s6, 1024  }
  0x2c   : > { %1185 = vsyncadd (%p1272_p4), %s202_s6, 4294966272 }
  0x2d   : > { %1187 = dma.done.wait (%p42_p1), [#allocation7], 576  }
  0x2e   : > { %1189 = vsyncadd (%p42_p1), [#allocation7], 4294966720  ;;  %vm248_vm0 = vcmask 253952   ;;  %v1213_v0 = vmov 0.0   ;;  %vm238_vm1 = vcmask 259072   ;;  %vm314_vm2 = vcmask 257024  }
  0x2f   : > { %250 = vst.msk [vmem:[#allocation2 + $0x8] sm:$0x1] %vm248_vm0, %v1213_v0  ;;  %v334_v1 = vld [vmem:[#allocation6 + $0xc] sm:$0x7]  ;;  %v297_v6 = vld [vmem:[%s1344_s7] sm:$0xf] }
  0x30   : > { %251 = vst.msk [vmem:[#allocation2 + $0x10] sm:$0x1] %vm248_vm0, %v1213_v0  ;;  %v1394_v2 = vperm.slane %v334_v1, 0  ;;  %v1396_v4 = vperm.slane %v334_v1, 1  ;;  %v301_v7 = vld [vmem:[%s1344_s7 + $0x10] sm:$0xf] }
  0x31   : > { %252 = vst.msk [vmem:[#allocation2 + $0x18] sm:$0x1] %vm248_vm0, %v1213_v0  ;;  %v298_v8 = vld [vmem:[%s1344_s7 + $0x4] sm:$0xf]  ;;  %v1403_v11 = vperm.slane %v334_v1, 2  ;;  %vm502_vm3 = vcmask 254976  }
  0x32   : > { %253 = vst.msk [vmem:[#allocation2 + $0x20] sm:$0x1] %vm248_vm0, %v1213_v0  ;;  %v302_v13 = vld [vmem:[%s1344_s7 + $0x14] sm:$0xf]  ;;  %v335_v14 = vld [vmem:[#allocation6 + $0x10] sm:$0x7] }
  0x33   : > { %256 = vst.msk [vmem:[#allocation2 + $0x38] sm:$0x1] %vm248_vm0, %v1213_v0  ;;  %v299_v17 = vld [vmem:[%s1344_s7 + $0x8] sm:$0xf]  ;;  %v1412_v18 = vperm.slane %v335_v14, 0  ;;  %v1414_v19 = vperm.slane %v335_v14, 1 }
  0x34   : > { %257 = vst.msk [vmem:[#allocation2 + $0x40] sm:$0x1] %vm248_vm0, %v1213_v0  ;;  %v336_v20 = vld [vmem:[#allocation6 + $0x14] sm:$0x7]  ;;  %v1420_v22 = vperm.slane %v335_v14, 2  ;;  %s990_s30 = sshll.u32 %s1340_s10, 3 }
  0x35   : > { %258 = vst.msk [vmem:[#allocation2 + $0x48] sm:$0x1] %vm248_vm0, %v1213_v0  ;;  %v1423_v23 = vld [vmem:[#allocation6] sm:$0x7]  ;;  %v337_v26 = vld [vmem:[#allocation6 + $0x18] sm:$0x7] }
  0x36   : > { %259 = vst.msk [vmem:[#allocation2 + $0x50] sm:$0x1] %vm248_vm0, %v1213_v0  ;;  %v1427_v30 = vperm.slane %v336_v20, 0  ;;  %v303_v32 = vld [vmem:[%s1344_s7 + $0x18] sm:$0xf]  ;;  %v568_v33 = vperm.slane %v1423_v23, 0 }
  0x37   : > { %262 = vst.msk [vmem:[#allocation2 + $0x68] sm:$0x1] %vm248_vm0, %v1213_v0  ;;  %v575_v34 = vperm.slane %v1423_v23, 1  ;;  %v582_v35 = vperm.slane %v1423_v23, 2  ;;  %v1434_v38 = vperm.slane %v336_v20, 1  ;;  %v1436_v39 = vperm.slane %v336_v20, 2 }
  0x38   : > { %263 = vst.msk [vmem:[#allocation2 + $0x70] sm:$0x1] %vm248_vm0, %v1213_v0  ;;  %v300_v40 = vld [vmem:[%s1344_s7 + $0xc] sm:$0xf]  ;;  %v304_v41 = vld [vmem:[%s1344_s7 + $0x1c] sm:$0xf] }
  0x39   : > { %264 = vst.msk [vmem:[#allocation2 + $0x78] sm:$0x1] %vm248_vm0, %v1213_v0  ;;  %v1441_v49 = vperm.slane %v337_v26, 0  ;;  %v1445_v54 = vperm.slane %v337_v26, 1  ;;  %v1449_v58 = vld [vmem:[#allocation6 + $0x4] sm:$0x7] }
  0x3a   : > { %265 = vst.msk [vmem:[#allocation2 + $0x80] sm:$0x1] %vm248_vm0, %v1213_v0  ;;  %v1451_v59 = vperm.slane %v337_v26, 2  ;;  %v339_v26 = vld [vmem:[#allocation6 + $0x20] sm:$0x7]  ;;  %s1632_s25 = scalar_lea.vmem [#allocation8], %s990_s30 }
  0x3b   : > { %268 = vst.msk [vmem:[#allocation2 + $0x98] sm:$0x1] %vm248_vm0, %v1213_v0  ;;  %s1002_s27 = sshll.u32 %s1263_s19, 3  ;;  %s838_s12 = sshll.u32 %s1632_s25, 4  ;;  %s839_s12 = int_to_ptr.vmem [resolvable:$true] %s838_s12 }
  0x3c   : > { %269 = vst.msk [vmem:[#allocation2 + $0xa0] sm:$0x1] %vm248_vm0, %v1213_v0  ;;  %s837_s13 = scalar_lea.hbm %s1683_s4, %s1002_s27  ;;  %s825_s19 = scalar_lea.sflag [#allocation5], %s1340_s10 }
  0x3d   : > { %270 = vst.msk [vmem:[#allocation2 + $0xa8] sm:$0x1] %vm248_vm0, %v1213_v0  ;;  %s840_s14 = sshll.u32 %s837_s13, 4  ;;  %s1158_s21 = scalar_lea.hbm %s1683_s4, 32  ;;  %s841_s14 = int_to_ptr.hbm [resolvable:$true] %s840_s14 }
  0x3e   : > { %271 = vst.msk [vmem:[#allocation2 + $0xb0] sm:$0x1] %vm248_vm0, %v1213_v0  ;;  %s1152_s20 = sshra.s32 %s841_s14, 4  ;;  %s1153_s20 = int_to_ptr.hbm [resolvable:$true] %s1152_s20 }
  0x3f   : > { %239 = vst.msk [vmem:[#allocation2] sm:$0x3f] %vm238_vm1, %v1213_v0  ;;  %s1154_s24 = scalar_lea.hbm %s1153_s20, 8  ;;  %p1159_p7 = scmp.lt.s32.totalorder %s1153_s20, %s1683_s4 }
  0x40   : > { %240 = vst.msk [vmem:[#allocation2 + $0x30] sm:$0x3f] %vm238_vm1, %v1213_v0  ;;  %p1155_p1 = scmp.ne.s32.totalorder %s1153_s20, %s1154_s24  ;;  %p1160_p2 = scmp.lt.s32.totalorder %s1158_s21, %s1154_s24 }
  0x41   : > { %249 = vst.msk [vmem:[#allocation2] sm:$0x1] %vm248_vm0, %v1213_v0 }
  0x42   : > { %255 = vst.msk [vmem:[#allocation2 + $0x30] sm:$0x1] %vm248_vm0, %v1213_v0  ;;  %p1156_p4 = pnand %p1155_p1, %p1310_p0  ;;  %p1161_p9 = por %p1160_p2, %p1159_p7 }
  0x43   : > { %315 = vst.msk [vmem:[#allocation2 + $0x9] sm:$0xf] %vm314_vm2, %v297_v6 }
  0x44   : > { %316 = vst.msk [vmem:[#allocation2 + $0x11] sm:$0xf] %vm314_vm2, %v298_v8  ;;  %v338_v8 = vld [vmem:[#allocation6 + $0x1c] sm:$0x7]  ;;  %p1157_p8 = pneg %p1156_p4 }
  0x45   : > { %319 = vst.msk [vmem:[#allocation2 + $0x39] sm:$0xf] %vm314_vm2, %v301_v7 }
  0x46   : > { %v351_v3 = vld [vmem:[#allocation2 + $0x1] ss:$2 sm:$0x3]  ;;  %v360_v12 = vld [vmem:[#allocation2 + $0x2] ss:$2 sm:$0x3]  ;;  %p1162_p10 = pnand %p1161_p9, %p1157_p8 }
  0x47   : > { %v355_v10 = vmul.f32 %v1396_v4, %v351_v3  ;;  %v364_v16 = vmul.f32 %v1403_v11, %v360_v12  ;;  %320 = vst.msk [vmem:[#allocation2 + $0x41] sm:$0xf] %vm314_vm2, %v302_v13  ;;  %v573_v43 = vld [vmem:[#allocation2 + $0x31] ss:$2 sm:$0x3] }
  0x48   : > { %v342_v5 = vld [vmem:[#allocation2] ss:$2 sm:$0x3]  ;;  %241 = vst.msk [vmem:[#allocation2 + $0x60] sm:$0x3f] %vm238_vm1, %v1213_v0  ;;  %v576_v62 = vmul.f32 %v575_v34, %v573_v43 }
  0x49   : > { %v346_v9 = vmul.f32 %v1394_v2, %v342_v5  ;;  %242 = vst.msk [vmem:[#allocation2 + $0x90] sm:$0x3f] %vm238_vm1, %v1213_v0  ;;  %v566_v47 = vld [vmem:[#allocation2 + $0x30] ss:$2 sm:$0x3] }
  0x4a   : > { %317 = vst.msk [vmem:[#allocation2 + $0x19] sm:$0xf] %vm314_vm2, %v299_v17  ;;  %v368_v24 = vld [vmem:[#allocation2 + $0x8] ss:$2 sm:$0x3]  ;;  %v569_v7 = vmul.f32 %v568_v33, %v566_v47  ;;  %v603_v47 = vperm.slane %v1449_v58, 2 }
  0x4b   : > { %v357_v15 = vadd.f32 %v355_v10, %v346_v9  ;;  %v377_v25 = vld [vmem:[#allocation2 + $0x9] ss:$2 sm:$0x3]  ;;  %v372_v27 = vmul.f32 %v1412_v18, %v368_v24  ;;  %v386_v29 = vld [vmem:[#allocation2 + $0xa] ss:$2 sm:$0x3] }
  0x4c   : > { %v381_v28 = vmul.f32 %v1414_v19, %v377_v25  ;;  %v395_v31 = vld [vmem:[#allocation2 + $0x10] ss:$2 sm:$0x3]  ;;  %v390_v37 = vmul.f32 %v1420_v22, %v386_v29  ;;  %v404_v42 = vld [vmem:[#allocation2 + $0x11] ss:$2 sm:$0x3] }
  0x4d   : > { %v366_v21 = vadd.f32 %v364_v16, %v357_v15  ;;  %v399_v45 = vmul.f32 %v1427_v30, %v395_v31  ;;  %v413_v46 = vld [vmem:[#allocation2 + $0x12] ss:$2 sm:$0x3]  ;;  %v431_v50 = vld [vmem:[#allocation2 + $0x31] ss:$2 sm:$0x3]  ;;  %v408_v53 = vmul.f32 %v1434_v38, %v404_v42  ;;  %v578_v31 = vadd.f32 %v576_v62, %v569_v7 }
  0x4e   : > { %v422_v48 = vld [vmem:[#allocation2 + $0x30] ss:$2 sm:$0x3]  ;;  %318 = vst.msk [vmem:[#allocation2 + $0x21] sm:$0xf] %vm314_vm2, %v300_v40  ;;  %v417_v1 = vmul.f32 %v1436_v39, %v413_v46  ;;  %v435_v15 = vmul.f32 %v1445_v54, %v431_v50  ;;  %v589_v25 = vperm.slane %v1449_v58, 0 }
  0x4f   : > { %v374_v36 = vadd.f32 %v372_v27, %v366_v21  ;;  %v344_v51 = vld [vmem:[#allocation2 + $0x10] ss:$2 sm:$0x3]  ;;  %321 = vst.msk [vmem:[#allocation2 + $0x49] sm:$0xf] %vm314_vm2, %v303_v32  ;;  %v426_v14 = vmul.f32 %v1441_v49, %v422_v48  ;;  %v596_v42 = vperm.slane %v1449_v58, 1 }
  0x50   : > { %v440_v55 = vld [vmem:[#allocation2 + $0x32] ss:$2 sm:$0x3]  ;;  %v347_v56 = vmul.f32 %v1394_v2, %v344_v51  ;;  %v353_v57 = vld [vmem:[#allocation2 + $0x11] ss:$2 sm:$0x3] }
  0x51   : > { %v383_v44 = vadd.f32 %v381_v28, %v374_v36  ;;  %322 = vst.msk [vmem:[#allocation2 + $0x51] sm:$0xf] %vm314_vm2, %v304_v41  ;;  %v356_v60 = vmul.f32 %v1396_v4, %v353_v57  ;;  %v362_v61 = vld [vmem:[#allocation2 + $0x12] ss:$2 sm:$0x3]  ;;  %v444_v17 = vmul.f32 %v1451_v59, %v440_v55  ;;  %v1471_v28 = vperm.slane %v338_v8, 0 }
  0x52   : > { %v365_v3 = vmul.f32 %v1403_v11, %v362_v61  ;;  %v370_v5 = vld [vmem:[#allocation2 + $0x18] ss:$2 sm:$0x3]  ;;  %v379_v6 = vld [vmem:[#allocation2 + $0x19] ss:$2 sm:$0x3] }
  0x53   : > { %v392_v52 = vadd.f32 %v390_v37, %v383_v44  ;;  %v358_v9 = vadd.f32 %v356_v60, %v347_v56  ;;  %v373_v10 = vmul.f32 %v1412_v18, %v370_v5  ;;  %v580_v12 = vld [vmem:[#allocation2 + $0x32] ss:$2 sm:$0x3]  ;;  %v388_v16 = vld [vmem:[#allocation2 + $0x1a] ss:$2 sm:$0x3]  ;;  %v382_v21 = vmul.f32 %v1414_v19, %v379_v6 }
  0x54   : > { %261 = vst.msk [vmem:[#allocation2 + $0x60] sm:$0x1] %vm248_vm0, %v1213_v0  ;;  %v1468_v24 = vld [vmem:[#allocation6 + $0x8] sm:$0x7]  ;;  %v583_v32 = vmul.f32 %v582_v35, %v580_v12  ;;  %v1475_v37 = vperm.slane %v338_v8, 1  ;;  %v391_v41 = vmul.f32 %v1420_v22, %v388_v16  ;;  %v1479_v44 = vperm.slane %v338_v8, 2 }
  0x55   : > { %v401_v63 = vadd.f32 %v399_v45, %v392_v52  ;;  %v367_v20 = vadd.f32 %v365_v3, %v358_v9  ;;  %v397_v29 = vld [vmem:[#allocation2 + $0x20] ss:$2 sm:$0x3]  ;;  %v449_v36 = vld [vmem:[#allocation2 + $0x38] ss:$2 sm:$0x3] }
  0x56   : > { %v406_v45 = vld [vmem:[#allocation2 + $0x21] ss:$2 sm:$0x3]  ;;  %v610_v48 = vperm.slane %v1468_v24, 0  ;;  %v306_v55 = vld [vmem:[%s1344_s7 + $0x24] sm:$0xf]  ;;  %v453_v57 = vmul.f32 %v1471_v28, %v449_v36 }
  0x57   : > { %v410_v13 = vadd.f32 %v408_v53, %v401_v63  ;;  %v375_v40 = vadd.f32 %v373_v10, %v367_v20  ;;  %v305_v46 = vld [vmem:[%s1344_s7 + $0x20] sm:$0xf]  ;;  %v458_v50 = vld [vmem:[#allocation2 + $0x39] ss:$2 sm:$0x3]  ;;  %v400_v53 = vmul.f32 %v1427_v30, %v397_v29  ;;  %v1487_v60 = vperm.slane %v339_v26, 0 }
  0x58   : > { %v467_v51 = vld [vmem:[#allocation2 + $0x3a] ss:$2 sm:$0x3]  ;;  %v415_v61 = vld [vmem:[#allocation2 + $0x22] ss:$2 sm:$0x3]  ;;  %v409_v6 = vmul.f32 %v1434_v38, %v406_v45  ;;  %v462_v12 = vmul.f32 %v1475_v37, %v458_v50 }
  0x59   : > { %v419_v27 = vadd.f32 %v417_v1, %v410_v13  ;;  %v384_v52 = vadd.f32 %v382_v21, %v375_v40  ;;  %v424_v62 = vld [vmem:[#allocation2 + $0x40] ss:$2 sm:$0x3]  ;;  %267 = vst.msk [vmem:[#allocation2 + $0x90] sm:$0x1] %vm248_vm0, %v1213_v0  ;;  %v585_v1 = vadd.f32 %v583_v32, %v578_v31  ;;  %v617_v9 = vperm.slane %v1468_v24, 1 }
  0x5a   : > { %v309_v63 = vld [vmem:[%s1344_s7 + $0x30] sm:$0xf]  ;;  %v476_v3 = vld [vmem:[#allocation2 + $0x40] ss:$2 sm:$0x3]  ;;  %v1496_v13 = vperm.slane %v339_v26, 1  ;;  %v418_v21 = vmul.f32 %v1436_v39, %v415_v61  ;;  %v471_v32 = vmul.f32 %v1479_v44, %v467_v51 }
  0x5b   : > { %v428_v43 = vadd.f32 %v426_v14, %v419_v27  ;;  %v393_v5 = vadd.f32 %v391_v41, %v384_v52  ;;  %v310_v7 = vld [vmem:[%s1344_s7 + $0x34] sm:$0xf]  ;;  %v587_v8 = vld [vmem:[#allocation2 + $0x38] ss:$2 sm:$0x3] }
  0x5c   : > { %v433_v14 = vld [vmem:[#allocation2 + $0x41] ss:$2 sm:$0x3]  ;;  %v594_v0 = vld [vmem:[#allocation2 + $0x39] ss:$2 sm:$0x3] }
  0x5d   : > { %v437_v56 = vadd.f32 %v435_v15, %v428_v43  ;;  %v590_v15 = vmul.f32 %v589_v25, %v587_v8  ;;  %v485_v16 = vld [vmem:[#allocation2 + $0x41] ss:$2 sm:$0x3]  ;;  %v402_v20 = vadd.f32 %v400_v53, %v393_v5  ;;  %323 = vst.msk [vmem:[#allocation2 + $0x69] sm:$0xf] %vm314_vm2, %v305_v46  ;;  %v597_v27 = vmul.f32 %v596_v42, %v594_v0 }
  0x5e   : > { %v601_v29 = vld [vmem:[#allocation2 + $0x3a] ss:$2 sm:$0x3]  ;;  %324 = vst.msk [vmem:[#allocation2 + $0x71] sm:$0xf] %vm314_vm2, %v306_v55  ;;  %v1509_v43 = vperm.slane %v339_v26, 2  ;;  %v427_v46 = vmul.f32 %v1441_v49, %v424_v62  ;;  %v480_v53 = vmul.f32 %v1487_v60, %v476_v3  ;;  %v436_v26 = vmul.f32 %v1445_v54, %v433_v14 }
  0x5f   : > { %v446_v10 = vadd.f32 %v444_v17, %v437_v56  ;;  %v624_v17 = vperm.slane %v1468_v24, 2  ;;  %v592_v36 = vadd.f32 %v590_v15, %v585_v1  ;;  %v604_v40 = vmul.f32 %v603_v47, %v601_v29  ;;  %v608_v41 = vld [vmem:[#allocation2 + $0x40] ss:$2 sm:$0x3]  ;;  %327 = vst.msk [vmem:[#allocation2 + $0x99] sm:$0xf] %vm314_vm2, %v309_v63 }
  0x60   : > { %v411_v45 = vadd.f32 %v409_v6, %v402_v20  ;;  %v615_v50 = vld [vmem:[#allocation2 + $0x41] ss:$2 sm:$0x3]  ;;  %v442_v56 = vld [vmem:[#allocation2 + $0x42] ss:$2 sm:$0x3]  ;;  %v611_v55 = vmul.f32 %v610_v48, %v608_v41  ;;  %v489_v62 = vmul.f32 %v1496_v13, %v485_v16 }
  0x61   : > { %v455_v31 = vadd.f32 %v453_v57, %v446_v10  ;;  %328 = vst.msk [vmem:[#allocation2 + $0xa1] sm:$0xf] %vm314_vm2, %v310_v7  ;;  %v599_v51 = vadd.f32 %v597_v27, %v592_v36  ;;  %v494_v57 = vld [vmem:[#allocation2 + $0x42] ss:$2 sm:$0x3]  ;;  %v618_v3 = vmul.f32 %v617_v9, %v615_v50  ;;  %v445_v7 = vmul.f32 %v1451_v59, %v442_v56 }
  0x62   : > { %v420_v61 = vadd.f32 %v418_v21, %v411_v45  ;;  %v622_v1 = vld [vmem:[#allocation2 + $0x42] ss:$2 sm:$0x3]  ;;  %v451_v63 = vld [vmem:[#allocation2 + $0x48] ss:$2 sm:$0x3]  ;;  %v498_v15 = vmul.f32 %v1509_v43, %v494_v57 }
  0x63   : > { %v464_v52 = vadd.f32 %v462_v12, %v455_v31  ;;  %v606_v6 = vadd.f32 %v604_v40, %v599_v51  ;;  %v630_v10 = vld [vmem:[#allocation2 + $0x60] ss:$2 sm:$0x3]  ;;  %v460_v0 = vld [vmem:[#allocation2 + $0x49] ss:$2 sm:$0x3]  ;;  %v625_v14 = vmul.f32 %v624_v17, %v622_v1  ;;  %v454_v16 = vmul.f32 %v1471_v28, %v451_v63 }
  0x64   : > { %v429_v8 = vadd.f32 %v427_v46, %v420_v61  ;;  %v638_v27 = vld [vmem:[#allocation2 + $0x61] ss:$2 sm:$0x3]  ;;  %v469_v31 = vld [vmem:[#allocation2 + $0x4a] ss:$2 sm:$0x3]  ;;  %v633_v36 = vmul.f32 %v630_v10, %v1394_v2  ;;  %v463_v41 = vmul.f32 %v1475_v37, %v460_v0 }
  0x65   : > { %v473_v5 = vadd.f32 %v471_v32, %v464_v52  ;;  %v613_v20 = vadd.f32 %v611_v55, %v606_v6  ;;  %v646_v45 = vld [vmem:[#allocation2 + $0x62] ss:$2 sm:$0x3]  ;;  %v478_v50 = vld [vmem:[#allocation2 + $0x50] ss:$2 sm:$0x3]  ;;  %v641_v56 = vmul.f32 %v638_v27, %v1396_v4  ;;  %v472_v55 = vmul.f32 %v1479_v44, %v469_v31 }
  0x66   : > { %v438_v21 = vadd.f32 %v436_v26, %v429_v8  ;;  %v487_v52 = vld [vmem:[#allocation2 + $0x51] ss:$2 sm:$0x3]  ;;  %v654_v57 = vld [vmem:[#allocation2 + $0x68] ss:$2 sm:$0x3]  ;;  %v481_v8 = vmul.f32 %v1487_v60, %v478_v50 }
  0x67   : > { %v482_v12 = vadd.f32 %v480_v53, %v473_v5  ;;  %v620_v32 = vadd.f32 %v618_v3, %v613_v20  ;;  %v662_v61 = vld [vmem:[#allocation2 + $0x69] ss:$2 sm:$0x3]  ;;  %v496_v1 = vld [vmem:[#allocation2 + $0x52] ss:$2 sm:$0x3]  ;;  %v657_v0 = vmul.f32 %v654_v57, %v1412_v18 }
  0x68   : > { %v447_v40 = vadd.f32 %v445_v7, %v438_v21  ;;  %v307_v63 = vld [vmem:[%s1344_s7 + $0x28] sm:$0xf]  ;;  %v308_v6 = vld [vmem:[%s1344_s7 + $0x2c] sm:$0xf]  ;;  %v311_v10 = vld [vmem:[%s1344_s7 + $0x38] sm:$0xf]  ;;  %v490_v21 = vmul.f32 %v1496_v13, %v487_v52 }
  0x69   : > { %v491_v29 = vadd.f32 %v489_v62, %v482_v12  ;;  %v627_v53 = vadd.f32 %v625_v14, %v620_v32  ;;  %v649_v62 = vmul.f32 %v646_v45, %v1403_v11  ;;  %v670_v7 = vld [vmem:[#allocation2 + $0x6a] ss:$2 sm:$0x3]  ;;  %v312_v12 = vld [vmem:[%s1344_s7 + $0x3c] sm:$0xf]  ;;  %v665_v32 = vmul.f32 %v662_v61, %v1414_v19 }
  0x6a   : > { %v456_v51 = vadd.f32 %v454_v16, %v447_v40  ;;  %325 = vst.msk [vmem:[#allocation2 + $0x79] sm:$0xf] %vm314_vm2, %v307_v63  ;;  %v567_v20 = vld [vmem:[#allocation2 + $0x40] ss:$2 sm:$0x3]  ;;  %v499_v45 = vmul.f32 %v1509_v43, %v496_v1 }
  0x6b   : > { %v1528_v46 = vadd.f32 %v498_v15, %v491_v29  ;;  %v635_v5 = vadd.f32 %v633_v36, %v627_v53  ;;  %326 = vst.msk [vmem:[#allocation2 + $0x81] sm:$0xf] %vm314_vm2, %v308_v6  ;;  %v678_v16 = vld [vmem:[#allocation2 + $0x70] ss:$2 sm:$0x3]  ;;  %v570_v27 = vmul.f32 %v568_v33, %v567_v20  ;;  %v673_v33 = vmul.f32 %v670_v7, %v1420_v22 }
  0x6c   : > { %v465_v3 = vadd.f32 %v463_v41, %v456_v51  ;;  %329 = vst.msk [vmem:[#allocation2 + $0xa9] sm:$0xf] %vm314_vm2, %v311_v10  ;;  %v574_v29 = vld [vmem:[#allocation2 + $0x41] ss:$2 sm:$0x3] }
  0x6d   : > { %v503_v26 = vsel %vm502_vm3, %v1528_v46, 0.0  ;;  %v643_v15 = vadd.f32 %v641_v56, %v635_v5  ;;  %330 = vst.msk [vmem:[#allocation2 + $0xb1] sm:$0xf] %vm314_vm2, %v312_v12  ;;  %v577_v36 = vmul.f32 %v575_v34, %v574_v29  ;;  %v581_v40 = vld [vmem:[#allocation2 + $0x42] ss:$2 sm:$0x3]  ;;  %v681_v5 = vmul.f32 %v678_v16, %v1427_v30 }
  0x6e   : > { %504 = vadd.xlane.f32.xlu0 %v503_v26  ;;  %v474_v14 = vadd.f32 %v472_v55, %v465_v3  ;;  %v584_v50 = vmul.f32 %v582_v35, %v581_v40  ;;  %v588_v52 = vld [vmem:[#allocation2 + $0x48] ss:$2 sm:$0x3]  ;;  %v595_v53 = vld [vmem:[#allocation2 + $0x49] ss:$2 sm:$0x3] }
  0x6f   : > { %v651_v31 = vadd.f32 %v649_v62, %v643_v15  ;;  %v579_v51 = vadd.f32 %v577_v36, %v570_v27  ;;  %v591_v55 = vmul.f32 %v589_v25, %v588_v52  ;;  %v686_v61 = vld [vmem:[#allocation2 + $0x71] ss:$2 sm:$0x3]  ;;  %v602_v26 = vld [vmem:[#allocation2 + $0x4a] ss:$2 sm:$0x3]  ;;  %v598_v23 = vmul.f32 %v596_v42, %v595_v53 }
  0x70   : > { %v483_v41 = vadd.f32 %v481_v8, %v474_v14  ;;  %v694_v1 = vld [vmem:[#allocation2 + $0x72] ss:$2 sm:$0x3]  ;;  %v689_v3 = vmul.f32 %v686_v61, %v1434_v38  ;;  %v605_v25 = vmul.f32 %v603_v47, %v602_v26  ;;  %v616_v12 = vld [vmem:[#allocation2 + $0x51] ss:$2 sm:$0x3] }
  0x71   : > { %v659_v56 = vadd.f32 %v657_v0, %v651_v31  ;;  %v586_v62 = vadd.f32 %v584_v50, %v579_v51  ;;  %v609_v63 = vld [vmem:[#allocation2 + $0x50] ss:$2 sm:$0x3]  ;;  %v697_v42 = vmul.f32 %v694_v1, %v1436_v39  ;;  %v710_v14 = vld [vmem:[#allocation2 + $0x91] ss:$2 sm:$0x3]  ;;  %v619_v58 = vmul.f32 %v617_v9, %v616_v12 }
  0x72   : > { %v492_v57 = vadd.f32 %v490_v21, %v483_v41  ;;  %v702_v8 = vld [vmem:[#allocation2 + $0x90] ss:$2 sm:$0x3]  ;;  %v612_v20 = vmul.f32 %v610_v48, %v609_v63  ;;  %v713_v36 = vmul.f32 %v710_v14, %v1445_v54  ;;  %v640_v48 = vld [vmem:[#allocation2 + $0x71] ss:$2 sm:$0x3] }
  0x73   : > { %v667_v34 = vadd.f32 %v665_v32, %v659_v56  ;;  %v593_v7 = vadd.f32 %v591_v55, %v586_v62  ;;  %v623_v21 = vld [vmem:[#allocation2 + $0x52] ss:$2 sm:$0x3]  ;;  %v705_v27 = vmul.f32 %v702_v8, %v1441_v49  ;;  %v642_v61 = vmul.f32 %v640_v48, %v1396_v4  ;;  %v742_v26 = vld [vmem:[#allocation2 + $0x9a] ss:$2 sm:$0x3] }
  0x74   : > { %v1560_v35 = vadd.f32 %v499_v45, %v492_v57  ;;  %v718_v47 = vld [vmem:[#allocation2 + $0x92] ss:$2 sm:$0x3]  ;;  %v626_v41 = vmul.f32 %v624_v17, %v623_v21  ;;  %v726_v45 = vld [vmem:[#allocation2 + $0x98] ss:$2 sm:$0x3] }
  0x75   : > { %v675_v6 = vadd.f32 %v673_v33, %v667_v34  ;;  %v600_v0 = vadd.f32 %v598_v23, %v593_v7  ;;  %v632_v31 = vld [vmem:[#allocation2 + $0x70] ss:$2 sm:$0x3]  ;;  %v721_v52 = vmul.f32 %v718_v47, %v1451_v59  ;;  %v734_v33 = vld [vmem:[#allocation2 + $0x99] ss:$2 sm:$0x3]  ;;  %v729_v55 = vmul.f32 %v726_v45, %v1471_v28 }
  0x76   : > { %v506_v10 = vsel %vm502_vm3, %v1560_v35, 0.0  ;;  %v634_v56 = vmul.f32 %v632_v31, %v1394_v2  ;;  %v648_v51 = vld [vmem:[#allocation2 + $0x72] ss:$2 sm:$0x3]  ;;  %v737_v17 = vmul.f32 %v734_v33, %v1475_v37  ;;  %v745_v2 = vmul.f32 %v742_v26, %v1479_v44 }
  0x77   : > { %507 = vadd.xlane.f32.xlu0 %v506_v10  ;;  %v683_v15 = vadd.f32 %v681_v5, %v675_v6  ;;  %v607_v29 = vadd.f32 %v605_v25, %v600_v0  ;;  %v656_v34 = vld [vmem:[#allocation2 + $0x78] ss:$2 sm:$0x3]  ;;  %v650_v62 = vmul.f32 %v648_v51, %v1403_v11  ;;  %v750_v23 = vld [vmem:[#allocation2 + $0xa0] ss:$2 sm:$0x3] }
  0x78   : > { %v664_v1 = vld [vmem:[#allocation2 + $0x79] ss:$2 sm:$0x3]  ;;  %v758_v8 = vld [vmem:[#allocation2 + $0xa1] ss:$2 sm:$0x3]  ;;  %v753_v4 = vmul.f32 %v750_v23, %v1487_v60 }
  0x79   : > { %v691_v16 = vadd.f32 %v689_v3, %v683_v15  ;;  %v614_v40 = vadd.f32 %v612_v20, %v607_v29  ;;  %v658_v3 = vmul.f32 %v656_v34, %v1412_v18  ;;  %v672_v7 = vld [vmem:[#allocation2 + $0x7a] ss:$2 sm:$0x3]  ;;  %v666_v12 = vmul.f32 %v664_v1, %v1414_v19  ;;  %v766_v15 = vld [vmem:[#allocation2 + $0xa2] ss:$2 sm:$0x3] }
  0x7a   : > { %v761_v11 = vmul.f32 %v758_v8, %v1496_v13  ;;  %v674_v14 = vmul.f32 %v672_v7, %v1420_v22  ;;  %v688_v21 = vld [vmem:[#allocation2 + $0x81] ss:$2 sm:$0x3]  ;;  %v769_v18 = vmul.f32 %v766_v15, %v1509_v43  ;;  %v736_v51 = vld [vmem:[#allocation2 + $0xa9] ss:$2 sm:$0x3] }
  0x7b   : > { %v699_v32 = vadd.f32 %v697_v42, %v691_v16  ;;  %v621_v53 = vadd.f32 %v619_v58, %v614_v40  ;;  %v680_v42 = vld [vmem:[#allocation2 + $0x80] ss:$2 sm:$0x3]  ;;  %v690_v19 = vmul.f32 %v688_v21, %v1434_v38  ;;  %v712_v45 = vld [vmem:[#allocation2 + $0xa1] ss:$2 sm:$0x3] }
  0x7c   : > { %v682_v29 = vmul.f32 %v680_v42, %v1427_v30  ;;  %v696_v58 = vld [vmem:[#allocation2 + $0x82] ss:$2 sm:$0x3]  ;;  %v714_v30 = vmul.f32 %v712_v45, %v1445_v54  ;;  %v752_v26 = vld [vmem:[#allocation2 + $0xb0] ss:$2 sm:$0x3] }
  0x7d   : > { %v707_v50 = vadd.f32 %v705_v27, %v699_v32  ;;  %v628_v57 = vadd.f32 %v626_v41, %v621_v53  ;;  %v704_v32 = vld [vmem:[#allocation2 + $0xa0] ss:$2 sm:$0x3]  ;;  %v698_v41 = vmul.f32 %v696_v58, %v1436_v39  ;;  %v744_v39 = vld [vmem:[#allocation2 + $0xaa] ss:$2 sm:$0x3]  ;;  %v754_v54 = vmul.f32 %v752_v26, %v1487_v60 }
  0x7f   : > { %v715_v9 = vadd.f32 %v713_v36, %v707_v50  ;;  %v636_v5 = vadd.f32 %v634_v56, %v628_v57  ;;  %v706_v50 = vmul.f32 %v704_v32, %v1441_v49  ;;  %v728_v56 = vld [vmem:[#allocation2 + $0xa8] ss:$2 sm:$0x3]  ;;  %v746_v49 = vmul.f32 %v744_v39, %v1479_v44 }
  0x81   : > { %v723_v24 = vadd.f32 %v721_v52, %v715_v9  ;;  %v644_v6 = vadd.f32 %v642_v61, %v636_v5  ;;  %v720_v52 = vld [vmem:[#allocation2 + $0xa2] ss:$2 sm:$0x3]  ;;  %v738_v61 = vmul.f32 %v736_v51, %v1475_v37  ;;  %v768_v5 = vld [vmem:[#allocation2 + $0xb2] ss:$2 sm:$0x3] }
  0x82   : > { %v722_v38 = vmul.f32 %v720_v52, %v1451_v59  ;;  %v770_v1 = vmul.f32 %v768_v5, %v1509_v43  ;;  %v1214_v37 = vmov 32.0  }
  0x83   : > { %v731_v63 = vadd.f32 %v729_v55, %v723_v24  ;;  %v652_v10 = vadd.f32 %v650_v62, %v644_v6  ;;  %v730_v55 = vmul.f32 %v728_v56, %v1471_v28  ;;  %v760_v24 = vld [vmem:[#allocation2 + $0xb1] ss:$2 sm:$0x3]  ;;  %1068 = vrcp.f32 %v1214_v37 }
  0x84   : > { %v762_v59 = vmul.f32 %v760_v24, %v1496_v13 }
  0x85   : > { %v739_v25 = vadd.f32 %v737_v17, %v731_v63  ;;  %v660_v20 = vadd.f32 %v658_v3, %v652_v10 }
  0x87   : > { %v747_v0 = vadd.f32 %v745_v2, %v739_v25  ;;  %v668_v27 = vadd.f32 %v666_v12, %v660_v20 }
  0x89   : > { %v755_v16 = vadd.f32 %v753_v4, %v747_v0  ;;  %v676_v31 = vadd.f32 %v674_v14, %v668_v27  ;;  %v1069_v6 = vpop.eup %1068 }
  0x8a   : > { %v510_v44 = vmul.f32 32.0, %v1069_v6  ;;  %vm514_vm4 = vweird.f32 %v1069_v6 }
  0x8b   : > { %v763_v47 = vadd.f32 %v761_v11, %v755_v16  ;;  %v684_v40 = vadd.f32 %v682_v29, %v676_v31 }
  0x8c   : > { %v511_v3 = vsub.f32 1.0, %v510_v44 }
  0x8d   : > { %v771_v36 = vadd.f32 %v769_v18, %v763_v47  ;;  %v692_v48 = vadd.f32 %v690_v19, %v684_v40 }
  0x8e   : > { %v512_v8 = vmul.f32 %v1069_v6, %v511_v3 }
  0x8f   : > { %v773_v22 = vsel %vm502_vm3, %v771_v36, 0.0  ;;  %v700_v53 = vadd.f32 %v698_v41, %v692_v48 }
  0x90   : > { %774 = vadd.xlane.f32.xlu1 %v773_v22  ;;  %v513_v7 = vadd.f32 %v1069_v6, %v512_v8 }
  0x91   : > { %v708_v33 = vadd.f32 %v706_v50, %v700_v53  ;;  %v1066_v53 = vld [vmem:[%s1681_s2] ss:$0 sm:$0xff] }
  0x92   : > { %v1603_v60 = vsel %vm514_vm4, %v1069_v6, %v513_v7 }
  0x93   : > { %v716_v9 = vadd.f32 %v714_v30, %v708_v33  ;;  %v1067_v33 = vld [vmem:[%s1682_s3] ss:$0 sm:$0xff] }
  0x95   : > { %v724_v57 = vadd.f32 %v722_v38, %v716_v9 }
  0x97   : > { %v732_v34 = vadd.f32 %v730_v55, %v724_v57 }
  0x99   : > { %v740_v17 = vadd.f32 %v738_v61, %v732_v34 }
  0x9b   : > { %v748_v62 = vadd.f32 %v746_v49, %v740_v17 }
  0x9d   : > { %v756_v23 = vadd.f32 %v754_v54, %v748_v62 }
  0x9f   : > { %v764_v28 = vadd.f32 %v762_v59, %v756_v23 }
  0xa1   : > { %v772_v63 = vadd.f32 %v770_v1, %v764_v28 }
  0xa3   : > { %v776_v2 = vsel %vm502_vm3, %v772_v63, 0.0 }
  0xa4   : > { %777 = vadd.xlane.f32.xlu1 %v776_v2 }
  0xe1   : > { %v505_v25 = vpop.xlane.xlu0 %504 }
  0xe2   : > { %v516_v13 = vmul.f32 %v1603_v60, %v505_v25 }
  0xe4   : > { %v518_v43 = vsub.f32 %v1528_v46, %v516_v13 }
  0xe6   : > { %v520_v4 = vmul.f32 %v518_v43, %v518_v43 }
  0xe8   : > { %v522_v10 = vsel %vm502_vm3, %v520_v4, 0.0 }
  0xe9   : > { %523 = vadd.xlane.f32.xlu2 %v522_v10 }
  0xea   : > { %v508_v12 = vpop.xlane.xlu0 %507 }
  0xeb   : > { %v517_v15 = vmul.f32 %v1603_v60, %v508_v12 }
  0xed   : > { %v519_v42 = vsub.f32 %v1560_v35, %v517_v15 }
  0xef   : > { %v521_v0 = vmul.f32 %v519_v42, %v519_v42 }
  0xf1   : > { %v525_v11 = vsel %vm502_vm3, %v521_v0, 0.0 }
  0xf2   : > { %526 = vadd.xlane.f32.xlu2 %v525_v11 }
 0x103   : > { %v775_v20 = vpop.xlane.xlu1 %774 }
 0x104   : > { %v779_v14 = vmul.f32 %v775_v20, %v1603_v60 }
 0x106   : > { %v1612_v21 = vsub.f32 %v771_v36, %v779_v14 }
 0x108   : > { %v783_v46 = vmul.f32 %v1612_v21, %v1612_v21 }
 0x10a   : > { %v785_v16 = vsel %vm502_vm3, %v783_v46, 0.0 }
 0x10b   : > { %786 = vadd.xlane.f32.xlu0 %v785_v16 }
 0x117   : > { %v778_v18 = vpop.xlane.xlu1 %777 }
 0x118   : > { %v780_v27 = vmul.f32 %v778_v18, %v1603_v60 }
 0x11a   : > { %v1618_v29 = vsub.f32 %v772_v63, %v780_v27 }
 0x11c   : > { %v784_v35 = vmul.f32 %v1618_v29, %v1618_v29 }
 0x11e   : > { %v788_v58 = vsel %vm502_vm3, %v784_v35, 0.0 }
 0x11f   : > { %789 = vadd.xlane.f32.xlu1 %v788_v58 }
 0x15c   : > { %v524_v47 = vpop.xlane.xlu2 %523 }
 0x15d   : > { %v528_v31 = vmul.f32 %v524_v47, %v1603_v60 }
 0x15f   : > { %v530_v19 = vadd.f32 1e-05, %v528_v31 }
 0x161   : > { %1070 = vrsqrt.f32 %v530_v19  ;;  %vm538_vm5 = vweird.f32 %v530_v19 }
 0x165   : > { %v527_v36 = vpop.xlane.xlu2 %526 }
 0x166   : > { %v529_v41 = vmul.f32 %v527_v36, %v1603_v60 }
 0x167   : > { %v1071_v32 = vpop.eup %1070 }
 0x168   : > { %v533_v40 = vmul.f32 %v1071_v32, %v530_v19  ;;  %v531_v22 = vadd.f32 1e-05, %v529_v41  ;;  %vm539_vm6 = vweird.f32 %v1071_v32 }
 0x169   : > { %vm540_vm7 = vmor %vm538_vm5, %vm539_vm6 }
 0x16a   : > { %v534_v45 = vmul.f32 %v1071_v32, %v533_v40  ;;  %1072 = vrsqrt.f32 %v531_v22  ;;  %vm548_vm8 = vweird.f32 %v531_v22 }
 0x16c   : > { %v535_v48 = vmul.f32 0.5, %v534_v45 }
 0x16e   : > { %v536_v50 = vsub.f32 1.5, %v535_v48 }
 0x170   : > { %v537_v52 = vmul.f32 %v1071_v32, %v536_v50  ;;  %v1073_v30 = vpop.eup %1072 }
 0x171   : > { %v543_v51 = vmul.f32 %v1073_v30, %v531_v22  ;;  %vm549_vm9 = vweird.f32 %v1073_v30 }
 0x172   : > { %v541_v56 = vsel %vm540_vm7, %v1071_v32, %v537_v52  ;;  %vm550_vm10 = vmor %vm548_vm8, %vm549_vm9 }
 0x173   : > { %v552_v38 = vmul.f32 %v541_v56, %v518_v43  ;;  %v544_v55 = vmul.f32 %v1073_v30, %v543_v51 }
 0x175   : > { %v557_v9 = vmul.f32 %v1066_v53, %v552_v38  ;;  %v545_v57 = vmul.f32 0.5, %v544_v55 }
 0x177   : > { %v562_v39 = vadd.f32 %v1067_v33, %v557_v9  ;;  %v546_v61 = vsub.f32 1.5, %v545_v57 }
 0x179   : > { %564 = vst.msk [vmem:[%s1632_s25] sm:$0x3] %vm502_vm3, %v562_v39  ;;  %v547_v26 = vmul.f32 %v1073_v30, %v546_v61 }
 0x17b   : > { %v551_v34 = vsel %vm550_vm10, %v1073_v30, %v547_v26 }
 0x17c   : > { %v553_v49 = vmul.f32 %v551_v34, %v519_v42 }
 0x17e   : > { %v558_v24 = vmul.f32 %v1066_v53, %v553_v49  ;;  %v787_v17 = vpop.xlane.xlu0 %786 }
 0x17f   : > { %v791_v54 = vmul.f32 %v787_v17, %v1603_v60 }
 0x180   : > { %v563_v5 = vadd.f32 %v1067_v33, %v558_v24 }
 0x181   : > { %v793_v62 = vadd.f32 1e-05, %v791_v54 }
 0x182   : > { %565 = vst.msk [vmem:[%s1632_s25 + $0x2] sm:$0x3] %vm502_vm3, %v563_v5 }
 0x183   : > { %1074 = vrsqrt.f32 %v793_v62  ;;  %vm801_vm12 = vweird.f32 %v793_v62 }
 0x189   : > { %v1075_v59 = vpop.eup %1074 }
 0x18a   : > { %v796_v23 = vmul.f32 %v1075_v59, %v793_v62  ;;  %vm802_vm11 = vweird.f32 %v1075_v59 }
 0x18b   : > { %vm803_vm13 = vmor %vm801_vm12, %vm802_vm11 }
 0x18c   : > { %v797_v1 = vmul.f32 %v1075_v59, %v796_v23 }
 0x18e   : > { %v798_v28 = vmul.f32 0.5, %v797_v1 }
 0x190   : > { %v799_v63 = vsub.f32 1.5, %v798_v28 }
 0x192   : > { %v800_v2 = vmul.f32 %v1075_v59, %v799_v63  ;;  %v790_v6 = vpop.xlane.xlu1 %789 }
 0x193   : > { %v792_v3 = vmul.f32 %v790_v6, %v1603_v60 }
 0x194   : > { %v804_v37 = vsel %vm803_vm13, %v1075_v59, %v800_v2 }
 0x195   : > { %v815_v44 = vmul.f32 %v804_v37, %v1612_v21  ;;  %v794_v7 = vadd.f32 1e-05, %v792_v3 }
 0x197   : > { %v817_v8 = vmul.f32 %v1066_v53, %v815_v44  ;;  %1076 = vrsqrt.f32 %v794_v7  ;;  %vm811_vm15 = vweird.f32 %v794_v7 }
 0x199   : > { %v819_v25 = vadd.f32 %v1067_v33, %v817_v8 }
 0x19b   : > { %991 = vst.msk [vmem:[%s1632_s25 + $0x4] sm:$0x3] %vm502_vm3, %v819_v25 }
 0x19d   : > { %v1077_v13 = vpop.eup %1076 }
 0x19e   : > { %v806_v43 = vmul.f32 %v1077_v13, %v794_v7  ;;  %vm812_vm14 = vweird.f32 %v1077_v13 }
 0x19f   : > { %vm813_vm0 = vmor %vm811_vm15, %vm812_vm14 }
 0x1a0   : > { %v807_v4 = vmul.f32 %v1077_v13, %v806_v43 }
 0x1a2   : > { %v808_v10 = vmul.f32 0.5, %v807_v4 }
 0x1a4   : > { %v809_v12 = vsub.f32 1.5, %v808_v10 }
 0x1a6   : > { %v810_v15 = vmul.f32 %v1077_v13, %v809_v12 }
 0x1a8   : > { %v814_v60 = vsel %vm813_vm0, %v1077_v13, %v810_v15 }
 0x1a9   : > { %v816_v42 = vmul.f32 %v814_v60, %v1618_v29 }
 0x1ab   : > { %v818_v0 = vmul.f32 %v1066_v53, %v816_v42 }
 0x1ad   : > { %v820_v11 = vadd.f32 %v1067_v33, %v818_v0 }
 0x1af   : > { %992 = vst.msk [vmem:[%s1632_s25 + $0x6] sm:$0x3] %vm502_vm3, %v820_v11 }
 0x1b0   : > { %1165 = shalt.err (!%p1162_p10)
}
 0x1b1   : > { %s1215_s10 = smov 32   ;;  %s1216_s5 = smov 2  }
 0x1b2   : > { %1009 = dma.vmem_to_hbm [thread:$0]  (%p1310_p0), %s839_s12, 128, %s841_s14, %s825_s19, %s1215_s10, %s1215_s10, %s1216_s5  }
 0x1b3 PF: > { %p1026_p11 = scmp.ge.s32.totalorder %s1208_s18, 2  ;;  %s855_s23 = sand.u32 1, %s1196_s15  }
 0x1b4   : > { %s856_s25 = scalar_lea.sflag [#allocation5], %s855_s23 }
 0x1b5   : > { %p1020_p12 = pnand %p1026_p11, %p1277_p6 }
 0x1b7   : > { %p1021_p13 = pneg %p1020_p12 }
 0x1b9   : > { %1191 = dma.done.wait (%p1021_p13), %s856_s25, 128  }
 0x1ba   : > { %1193 = vsyncadd (%p1021_p13), %s856_s25, 4294967168  ;;  %p18_p3 = scmp.ge.s32.totalorder %s1294_s29, 6   ;;  %s1689_s15 = smov %s1200_s16 }
 0x1bb   : > { %s1690_s16 = smov %s1204_s17  ;;  %s1691_s17 = smov %s1306_s8 }
 0x1bc   : > { %s1692_s18 = smov %s1294_s29  ;;  %20 = sbr.rel (!%p18_p3) target bundleno = 6 (0x6), region = 158 }
 0x1c1   :  { %862 = vsyncpa [#allocation4], 1 }
 0x1c2   :  { %864 = vsyncpa [#allocation4 + $0x1], 1 }
 0x1c3   :  { %865 = vsyncpa [#allocation7], 1 }
 0x1c4   :  { %866 = vsyncpa [#allocation5], 1 }
 0x1c5   :  { %868 = vsyncpa [#allocation5 + $0x1], 1 }

</bundles_post_ra>
